<compile_context>
chip_gen: v7x
topology: tpu7x:2x2x1
jax: 0.10.0
libtpu: 0.0.40
codegen_flags: <defaults>
</compile_context>

<pallas_src>
import jax
import jax.numpy as jnp
import numpy as np
from jax.experimental import pallas as pl
from jax.experimental.pallas import tpu as pltpu


def _taid_kernel(x_ref, w_ref, y_ref):
    # x_ref: (1, T, C, HW)   w_ref: (K*T_in, T_out)   y_ref: (1, C, HW)
    _, T, C, HW = x_ref.shape
    K = w_ref.shape[0] // T
    inv_hw = jnp.float32(1.0 / HW)
    w = w_ref[...]                                           # (K*T, T) tiny, keep resident

    # ---- pass 1: temporal attention gate g[c, t_out] -------------------------------------
    # conv[c, t_out] = sum_{j, t_in} W[t_out, t_in, j] * mean_s(x[t_in, c+j, s])
    # (PyTorch 'same' padding for even K: zero only on the right / high-c side.)
    conv = jnp.zeros((C, T), jnp.float32)
    for t_in in range(T):
        xt = x_ref[0, t_in]                                  # (C, HW)
        col = jnp.sum(xt, axis=-1, keepdims=True) * inv_hw   # (C, 1) spatial mean, lane-dense reduce
        for j in range(K):
            if j == 0:
                colj = col
            else:                                            # shift channels up by j, zero-fill tail
                colj = jnp.concatenate(
                    [col[j:, :], jnp.zeros((j, 1), jnp.float32)], axis=0)
            row = w[j * T + t_in:j * T + t_in + 1, :]        # (1, T_out)
            conv = conv + colj * row                         # rank-1 VPU FMA: (C,1)*(1,T)
    g = jax.nn.sigmoid(conv)                                 # (C, T)

    # ---- pass 2: y[c, s] = sum_t x[t, c, s] * g[c, t] ------------------------------------
    acc = x_ref[0, 0] * g[:, 0:1]
    for t in range(1, T):
        acc = acc + x_ref[0, t] * g[:, t:t + 1]              # g column broadcast along HW lanes
    y_ref[0] = acc.astype(y_ref.dtype)


@jax.jit
def taid_decoding(x_seq, w_t):
    """x_seq: [N, C, H, W, T] float32; w_t: [T, T, K] Conv1d weight. Returns [N, C, H, W]."""
    N, C, H, W, T = x_seq.shape
    K = w_t.shape[2]
    HW = H * W

    # Lane-friendly layout: [N, T, C, HW].  (In the real model the producer would emit this
    # layout directly; here one fused XLA transpose converts from the PyTorch input layout.)
    x4 = jnp.transpose(x_seq.reshape(N, C, HW, T), (0, 3, 1, 2))
    # (T_out, T_in, K) -> (K*T_in, T_out): row j*T + t_in holds W[:, t_in, j].
    w_arr = jnp.transpose(w_t, (2, 1, 0)).reshape(K * T, T)

    # One whole sample per grid step: T*C*HW*4 B (e.g. ~4 MiB at C=128, 32x32 spatial) fits
    # comfortably in VMEM even on v7x once double-buffered.
    # TODO(synk): for much larger C/HW (sample > VMEM) tile over C with a K-1 channel halo.
    y3 = pl.pallas_call(
        _taid_kernel,
        out_shape=jax.ShapeDtypeStruct((N, C, HW), x_seq.dtype),
        grid_spec=pl.GridSpec(
            grid=(N,),
            in_specs=[
                pl.BlockSpec((1, T, C, HW), lambda n: (n, 0, 0, 0)),
                pl.BlockSpec((K * T, T), lambda n: (0, 0)),
            ],
            out_specs=pl.BlockSpec((1, C, HW), lambda n: (n, 0, 0)),
        ),
        compiler_params=pltpu.CompilerParams(
            dimension_semantics=("parallel",)),
    )(x4, w_arr)
    return y3.reshape(N, C, H, W)


def taid_reference(x_seq, w_t):
    """Pure-JAX reference mirroring the PyTorch forward exactly."""
    xs = jnp.transpose(x_seq, (4, 0, 1, 2, 3))                     # [T,N,C,H,W]
    x = jnp.mean(jnp.transpose(xs, (1, 0, 2, 3, 4)), axis=(3, 4))  # [N,T,C]
    N, T, C = x.shape
    K = w_t.shape[2]
    left = (K - 1) // 2                                            # torch 'same': even K pads extra right
    xpad = jnp.pad(x, ((0, 0), (0, 0), (left, (K - 1) - left)))
    conv = jnp.zeros((N, T, C), jnp.float32)
    for j in range(K):
        seg = xpad[:, :, j:j + C]                                  # [N,T_in,C]
        conv = conv + jnp.sum(
            w_t[None, :, :, j, None] * seg[:, None, :, :], axis=2)
    out = jax.nn.sigmoid(jnp.transpose(conv, (1, 0, 2)))           # [T,N,C]
    y = jnp.sum(xs * out[:, :, :, None, None], axis=0)             # [N,C,H,W]
    return y


if __name__ == "__main__":
    # Small shapes consistent with the module: T=8 time steps, 32 channels, 16x16 spatial
    # (H*W = 256 -> lane-dense, multiple of 128), batch 2 (feeds both v7x TensorCores).
    N, C, H, W, T = 2, 32, 16, 16, 8
    Kt, Kc = 2, 1

    key = jax.random.PRNGKey(0)
    k1, k2, k3 = jax.random.split(key, 3)
    x_seq = jax.random.normal(k1, (N, C, H, W, T), jnp.float32)

    # Deterministic synthetic init (exact init scheme doesn't matter for the kernel).
    bound_t = 1.0 / (T * Kt) ** 0.5
    w_t = jax.random.uniform(k2, (T, T, Kt), jnp.float32, -bound_t, bound_t)
    bound_c = 1.0 / (C * Kc) ** 0.5
    w_c = jax.random.uniform(k3, (C, C, Kc), jnp.float32, -bound_c, bound_c)
    # w_c corresponds to self.conv_c, which is never used in the PyTorch forward (dead code).

    y = taid_decoding(x_seq, w_t)
    y = jax.block_until_ready(y)

    y_ref = taid_reference(x_seq, w_t)
    assert y.shape == (N, C, H, W)
    np.testing.assert_allclose(np.asarray(y), np.asarray(y_ref), rtol=1e-4, atol=1e-4)
    print("KERNEL_OK")
</pallas_src>

<mosaic_0001>
module attributes {stable_mosaic.version = 11 : i64} {
  func.func @_taid_kernel(%arg0: i32, %arg1: memref<1x8x32x256xf32, #tpu.memory_space<vmem>>, %arg2: memref<16x8xf32, #tpu.memory_space<vmem>>, %arg3: memref<1x32x256xf32, #tpu.memory_space<vmem>>) attributes {dimension_semantics = [#tpu.dimension_semantics<parallel>], iteration_bounds = array<i64: 2>, scalar_prefetch = 0 : i64, scratch_operands = 0 : i64, tpu.core_type = #tpu.core_type<tc>, window_params = [{transform_indices = @transform_0, window_bounds = array<i64: 1, 8, 32, 256>}, {pipeline_mode = #tpu.pipeline_mode<synchronous>, transform_indices = @transform_1, window_bounds = array<i64: 16, 8>}, {transform_indices = @transform_2, window_bounds = array<i64: 1, 32, 256>}]} {
    %c0 = arith.constant 0 : index
    %c0_0 = arith.constant 0 : index
    %0 = vector.load %arg2[%c0, %c0_0] : memref<16x8xf32, #tpu.memory_space<vmem>>, vector<16x8xf32>
    %cst = arith.constant 0.000000e+00 : f32
    %1 = vector.broadcast %cst : f32 to vector<32x8xf32>
    %c0_1 = arith.constant 0 : index
    %c0_2 = arith.constant 0 : index
    %c0_3 = arith.constant 0 : index
    %c0_4 = arith.constant 0 : index
    %2 = vector.load %arg1[%c0_1, %c0_2, %c0_3, %c0_4] : memref<1x8x32x256xf32, #tpu.memory_space<vmem>>, vector<1x1x32x256xf32>
    %3 = vector.shape_cast %2 : vector<1x1x32x256xf32> to vector<32x256xf32>
    %cst_5 = arith.constant dense<0.000000e+00> : vector<32xf32>
    %4 = vector.multi_reduction <add>, %3, %cst_5 [1] : vector<32x256xf32> to vector<32xf32>
    %5 = vector.shape_cast %4 : vector<32xf32> to vector<32x1xf32>
    %cst_6 = arith.constant 3.906250e-03 : f32
    %6 = vector.broadcast %cst_6 : f32 to vector<32x1xf32>
    %7 = arith.mulf %5, %6 : vector<32x1xf32>
    %8 = vector.extract_strided_slice %0 {offsets = [0, 0], sizes = [1, 8], strides = [1, 1]} : vector<16x8xf32> to vector<1x8xf32>
    %9 = vector.broadcast %7 : vector<32x1xf32> to vector<32x8xf32>
    %10 = vector.broadcast %8 : vector<1x8xf32> to vector<32x8xf32>
    %11 = arith.mulf %9, %10 : vector<32x8xf32>
    %12 = arith.addf %1, %11 : vector<32x8xf32>
    %13 = vector.extract_strided_slice %7 {offsets = [1, 0], sizes = [31, 1], strides = [1, 1]} : vector<32x1xf32> to vector<31x1xf32>
    %cst_7 = arith.constant 0.000000e+00 : f32
    %14 = vector.broadcast %cst_7 : f32 to vector<1x1xf32>
    %15 = tpu.concatenate %13, %14 in 0 : vector<31x1xf32>, vector<1x1xf32> -> vector<32x1xf32>
    %16 = vector.extract_strided_slice %0 {offsets = [8, 0], sizes = [1, 8], strides = [1, 1]} : vector<16x8xf32> to vector<1x8xf32>
    %17 = vector.broadcast %15 : vector<32x1xf32> to vector<32x8xf32>
    %18 = vector.broadcast %16 : vector<1x8xf32> to vector<32x8xf32>
    %19 = arith.mulf %17, %18 : vector<32x8xf32>
    %20 = arith.addf %12, %19 : vector<32x8xf32>
    %c0_8 = arith.constant 0 : index
    %c1 = arith.constant 1 : index
    %c0_9 = arith.constant 0 : index
    %c0_10 = arith.constant 0 : index
    %21 = vector.load %arg1[%c0_8, %c1, %c0_9, %c0_10] : memref<1x8x32x256xf32, #tpu.memory_space<vmem>>, vector<1x1x32x256xf32>
    %22 = vector.shape_cast %21 : vector<1x1x32x256xf32> to vector<32x256xf32>
    %cst_11 = arith.constant dense<0.000000e+00> : vector<32xf32>
    %23 = vector.multi_reduction <add>, %22, %cst_11 [1] : vector<32x256xf32> to vector<32xf32>
    %24 = vector.shape_cast %23 : vector<32xf32> to vector<32x1xf32>
    %cst_12 = arith.constant 3.906250e-03 : f32
    %25 = vector.broadcast %cst_12 : f32 to vector<32x1xf32>
    %26 = arith.mulf %24, %25 : vector<32x1xf32>
    %27 = vector.extract_strided_slice %0 {offsets = [1, 0], sizes = [1, 8], strides = [1, 1]} : vector<16x8xf32> to vector<1x8xf32>
    %28 = vector.broadcast %26 : vector<32x1xf32> to vector<32x8xf32>
    %29 = vector.broadcast %27 : vector<1x8xf32> to vector<32x8xf32>
    %30 = arith.mulf %28, %29 : vector<32x8xf32>
    %31 = arith.addf %20, %30 : vector<32x8xf32>
    %32 = vector.extract_strided_slice %26 {offsets = [1, 0], sizes = [31, 1], strides = [1, 1]} : vector<32x1xf32> to vector<31x1xf32>
    %cst_13 = arith.constant 0.000000e+00 : f32
    %33 = vector.broadcast %cst_13 : f32 to vector<1x1xf32>
    %34 = tpu.concatenate %32, %33 in 0 : vector<31x1xf32>, vector<1x1xf32> -> vector<32x1xf32>
    %35 = vector.extract_strided_slice %0 {offsets = [9, 0], sizes = [1, 8], strides = [1, 1]} : vector<16x8xf32> to vector<1x8xf32>
    %36 = vector.broadcast %34 : vector<32x1xf32> to vector<32x8xf32>
    %37 = vector.broadcast %35 : vector<1x8xf32> to vector<32x8xf32>
    %38 = arith.mulf %36, %37 : vector<32x8xf32>
    %39 = arith.addf %31, %38 : vector<32x8xf32>
    %c0_14 = arith.constant 0 : index
    %c2 = arith.constant 2 : index
    %c0_15 = arith.constant 0 : index
    %c0_16 = arith.constant 0 : index
    %40 = vector.load %arg1[%c0_14, %c2, %c0_15, %c0_16] : memref<1x8x32x256xf32, #tpu.memory_space<vmem>>, vector<1x1x32x256xf32>
    %41 = vector.shape_cast %40 : vector<1x1x32x256xf32> to vector<32x256xf32>
    %cst_17 = arith.constant dense<0.000000e+00> : vector<32xf32>
    %42 = vector.multi_reduction <add>, %41, %cst_17 [1] : vector<32x256xf32> to vector<32xf32>
    %43 = vector.shape_cast %42 : vector<32xf32> to vector<32x1xf32>
    %cst_18 = arith.constant 3.906250e-03 : f32
    %44 = vector.broadcast %cst_18 : f32 to vector<32x1xf32>
    %45 = arith.mulf %43, %44 : vector<32x1xf32>
    %46 = vector.extract_strided_slice %0 {offsets = [2, 0], sizes = [1, 8], strides = [1, 1]} : vector<16x8xf32> to vector<1x8xf32>
    %47 = vector.broadcast %45 : vector<32x1xf32> to vector<32x8xf32>
    %48 = vector.broadcast %46 : vector<1x8xf32> to vector<32x8xf32>
    %49 = arith.mulf %47, %48 : vector<32x8xf32>
    %50 = arith.addf %39, %49 : vector<32x8xf32>
    %51 = vector.extract_strided_slice %45 {offsets = [1, 0], sizes = [31, 1], strides = [1, 1]} : vector<32x1xf32> to vector<31x1xf32>
    %cst_19 = arith.constant 0.000000e+00 : f32
    %52 = vector.broadcast %cst_19 : f32 to vector<1x1xf32>
    %53 = tpu.concatenate %51, %52 in 0 : vector<31x1xf32>, vector<1x1xf32> -> vector<32x1xf32>
    %54 = vector.extract_strided_slice %0 {offsets = [10, 0], sizes = [1, 8], strides = [1, 1]} : vector<16x8xf32> to vector<1x8xf32>
    %55 = vector.broadcast %53 : vector<32x1xf32> to vector<32x8xf32>
    %56 = vector.broadcast %54 : vector<1x8xf32> to vector<32x8xf32>
    %57 = arith.mulf %55, %56 : vector<32x8xf32>
    %58 = arith.addf %50, %57 : vector<32x8xf32>
    %c0_20 = arith.constant 0 : index
    %c3 = arith.constant 3 : index
    %c0_21 = arith.constant 0 : index
    %c0_22 = arith.constant 0 : index
    %59 = vector.load %arg1[%c0_20, %c3, %c0_21, %c0_22] : memref<1x8x32x256xf32, #tpu.memory_space<vmem>>, vector<1x1x32x256xf32>
    %60 = vector.shape_cast %59 : vector<1x1x32x256xf32> to vector<32x256xf32>
    %cst_23 = arith.constant dense<0.000000e+00> : vector<32xf32>
    %61 = vector.multi_reduction <add>, %60, %cst_23 [1] : vector<32x256xf32> to vector<32xf32>
    %62 = vector.shape_cast %61 : vector<32xf32> to vector<32x1xf32>
    %cst_24 = arith.constant 3.906250e-03 : f32
    %63 = vector.broadcast %cst_24 : f32 to vector<32x1xf32>
    %64 = arith.mulf %62, %63 : vector<32x1xf32>
    %65 = vector.extract_strided_slice %0 {offsets = [3, 0], sizes = [1, 8], strides = [1, 1]} : vector<16x8xf32> to vector<1x8xf32>
    %66 = vector.broadcast %64 : vector<32x1xf32> to vector<32x8xf32>
    %67 = vector.broadcast %65 : vector<1x8xf32> to vector<32x8xf32>
    %68 = arith.mulf %66, %67 : vector<32x8xf32>
    %69 = arith.addf %58, %68 : vector<32x8xf32>
    %70 = vector.extract_strided_slice %64 {offsets = [1, 0], sizes = [31, 1], strides = [1, 1]} : vector<32x1xf32> to vector<31x1xf32>
    %cst_25 = arith.constant 0.000000e+00 : f32
    %71 = vector.broadcast %cst_25 : f32 to vector<1x1xf32>
    %72 = tpu.concatenate %70, %71 in 0 : vector<31x1xf32>, vector<1x1xf32> -> vector<32x1xf32>
    %73 = vector.extract_strided_slice %0 {offsets = [11, 0], sizes = [1, 8], strides = [1, 1]} : vector<16x8xf32> to vector<1x8xf32>
    %74 = vector.broadcast %72 : vector<32x1xf32> to vector<32x8xf32>
    %75 = vector.broadcast %73 : vector<1x8xf32> to vector<32x8xf32>
    %76 = arith.mulf %74, %75 : vector<32x8xf32>
    %77 = arith.addf %69, %76 : vector<32x8xf32>
    %c0_26 = arith.constant 0 : index
    %c4 = arith.constant 4 : index
    %c0_27 = arith.constant 0 : index
    %c0_28 = arith.constant 0 : index
    %78 = vector.load %arg1[%c0_26, %c4, %c0_27, %c0_28] : memref<1x8x32x256xf32, #tpu.memory_space<vmem>>, vector<1x1x32x256xf32>
    %79 = vector.shape_cast %78 : vector<1x1x32x256xf32> to vector<32x256xf32>
    %cst_29 = arith.constant dense<0.000000e+00> : vector<32xf32>
    %80 = vector.multi_reduction <add>, %79, %cst_29 [1] : vector<32x256xf32> to vector<32xf32>
    %81 = vector.shape_cast %80 : vector<32xf32> to vector<32x1xf32>
    %cst_30 = arith.constant 3.906250e-03 : f32
    %82 = vector.broadcast %cst_30 : f32 to vector<32x1xf32>
    %83 = arith.mulf %81, %82 : vector<32x1xf32>
    %84 = vector.extract_strided_slice %0 {offsets = [4, 0], sizes = [1, 8], strides = [1, 1]} : vector<16x8xf32> to vector<1x8xf32>
    %85 = vector.broadcast %83 : vector<32x1xf32> to vector<32x8xf32>
    %86 = vector.broadcast %84 : vector<1x8xf32> to vector<32x8xf32>
    %87 = arith.mulf %85, %86 : vector<32x8xf32>
    %88 = arith.addf %77, %87 : vector<32x8xf32>
    %89 = vector.extract_strided_slice %83 {offsets = [1, 0], sizes = [31, 1], strides = [1, 1]} : vector<32x1xf32> to vector<31x1xf32>
    %cst_31 = arith.constant 0.000000e+00 : f32
    %90 = vector.broadcast %cst_31 : f32 to vector<1x1xf32>
    %91 = tpu.concatenate %89, %90 in 0 : vector<31x1xf32>, vector<1x1xf32> -> vector<32x1xf32>
    %92 = vector.extract_strided_slice %0 {offsets = [12, 0], sizes = [1, 8], strides = [1, 1]} : vector<16x8xf32> to vector<1x8xf32>
    %93 = vector.broadcast %91 : vector<32x1xf32> to vector<32x8xf32>
    %94 = vector.broadcast %92 : vector<1x8xf32> to vector<32x8xf32>
    %95 = arith.mulf %93, %94 : vector<32x8xf32>
    %96 = arith.addf %88, %95 : vector<32x8xf32>
    %c0_32 = arith.constant 0 : index
    %c5 = arith.constant 5 : index
    %c0_33 = arith.constant 0 : index
    %c0_34 = arith.constant 0 : index
    %97 = vector.load %arg1[%c0_32, %c5, %c0_33, %c0_34] : memref<1x8x32x256xf32, #tpu.memory_space<vmem>>, vector<1x1x32x256xf32>
    %98 = vector.shape_cast %97 : vector<1x1x32x256xf32> to vector<32x256xf32>
    %cst_35 = arith.constant dense<0.000000e+00> : vector<32xf32>
    %99 = vector.multi_reduction <add>, %98, %cst_35 [1] : vector<32x256xf32> to vector<32xf32>
    %100 = vector.shape_cast %99 : vector<32xf32> to vector<32x1xf32>
    %cst_36 = arith.constant 3.906250e-03 : f32
    %101 = vector.broadcast %cst_36 : f32 to vector<32x1xf32>
    %102 = arith.mulf %100, %101 : vector<32x1xf32>
    %103 = vector.extract_strided_slice %0 {offsets = [5, 0], sizes = [1, 8], strides = [1, 1]} : vector<16x8xf32> to vector<1x8xf32>
    %104 = vector.broadcast %102 : vector<32x1xf32> to vector<32x8xf32>
    %105 = vector.broadcast %103 : vector<1x8xf32> to vector<32x8xf32>
    %106 = arith.mulf %104, %105 : vector<32x8xf32>
    %107 = arith.addf %96, %106 : vector<32x8xf32>
    %108 = vector.extract_strided_slice %102 {offsets = [1, 0], sizes = [31, 1], strides = [1, 1]} : vector<32x1xf32> to vector<31x1xf32>
    %cst_37 = arith.constant 0.000000e+00 : f32
    %109 = vector.broadcast %cst_37 : f32 to vector<1x1xf32>
    %110 = tpu.concatenate %108, %109 in 0 : vector<31x1xf32>, vector<1x1xf32> -> vector<32x1xf32>
    %111 = vector.extract_strided_slice %0 {offsets = [13, 0], sizes = [1, 8], strides = [1, 1]} : vector<16x8xf32> to vector<1x8xf32>
    %112 = vector.broadcast %110 : vector<32x1xf32> to vector<32x8xf32>
    %113 = vector.broadcast %111 : vector<1x8xf32> to vector<32x8xf32>
    %114 = arith.mulf %112, %113 : vector<32x8xf32>
    %115 = arith.addf %107, %114 : vector<32x8xf32>
    %c0_38 = arith.constant 0 : index
    %c6 = arith.constant 6 : index
    %c0_39 = arith.constant 0 : index
    %c0_40 = arith.constant 0 : index
    %116 = vector.load %arg1[%c0_38, %c6, %c0_39, %c0_40] : memref<1x8x32x256xf32, #tpu.memory_space<vmem>>, vector<1x1x32x256xf32>
    %117 = vector.shape_cast %116 : vector<1x1x32x256xf32> to vector<32x256xf32>
    %cst_41 = arith.constant dense<0.000000e+00> : vector<32xf32>
    %118 = vector.multi_reduction <add>, %117, %cst_41 [1] : vector<32x256xf32> to vector<32xf32>
    %119 = vector.shape_cast %118 : vector<32xf32> to vector<32x1xf32>
    %cst_42 = arith.constant 3.906250e-03 : f32
    %120 = vector.broadcast %cst_42 : f32 to vector<32x1xf32>
    %121 = arith.mulf %119, %120 : vector<32x1xf32>
    %122 = vector.extract_strided_slice %0 {offsets = [6, 0], sizes = [1, 8], strides = [1, 1]} : vector<16x8xf32> to vector<1x8xf32>
    %123 = vector.broadcast %121 : vector<32x1xf32> to vector<32x8xf32>
    %124 = vector.broadcast %122 : vector<1x8xf32> to vector<32x8xf32>
    %125 = arith.mulf %123, %124 : vector<32x8xf32>
    %126 = arith.addf %115, %125 : vector<32x8xf32>
    %127 = vector.extract_strided_slice %121 {offsets = [1, 0], sizes = [31, 1], strides = [1, 1]} : vector<32x1xf32> to vector<31x1xf32>
    %cst_43 = arith.constant 0.000000e+00 : f32
    %128 = vector.broadcast %cst_43 : f32 to vector<1x1xf32>
    %129 = tpu.concatenate %127, %128 in 0 : vector<31x1xf32>, vector<1x1xf32> -> vector<32x1xf32>
    %130 = vector.extract_strided_slice %0 {offsets = [14, 0], sizes = [1, 8], strides = [1, 1]} : vector<16x8xf32> to vector<1x8xf32>
    %131 = vector.broadcast %129 : vector<32x1xf32> to vector<32x8xf32>
    %132 = vector.broadcast %130 : vector<1x8xf32> to vector<32x8xf32>
    %133 = arith.mulf %131, %132 : vector<32x8xf32>
    %134 = arith.addf %126, %133 : vector<32x8xf32>
    %c0_44 = arith.constant 0 : index
    %c7 = arith.constant 7 : index
    %c0_45 = arith.constant 0 : index
    %c0_46 = arith.constant 0 : index
    %135 = vector.load %arg1[%c0_44, %c7, %c0_45, %c0_46] : memref<1x8x32x256xf32, #tpu.memory_space<vmem>>, vector<1x1x32x256xf32>
    %136 = vector.shape_cast %135 : vector<1x1x32x256xf32> to vector<32x256xf32>
    %cst_47 = arith.constant dense<0.000000e+00> : vector<32xf32>
    %137 = vector.multi_reduction <add>, %136, %cst_47 [1] : vector<32x256xf32> to vector<32xf32>
    %138 = vector.shape_cast %137 : vector<32xf32> to vector<32x1xf32>
    %cst_48 = arith.constant 3.906250e-03 : f32
    %139 = vector.broadcast %cst_48 : f32 to vector<32x1xf32>
    %140 = arith.mulf %138, %139 : vector<32x1xf32>
    %141 = vector.extract_strided_slice %0 {offsets = [7, 0], sizes = [1, 8], strides = [1, 1]} : vector<16x8xf32> to vector<1x8xf32>
    %142 = vector.broadcast %140 : vector<32x1xf32> to vector<32x8xf32>
    %143 = vector.broadcast %141 : vector<1x8xf32> to vector<32x8xf32>
    %144 = arith.mulf %142, %143 : vector<32x8xf32>
    %145 = arith.addf %134, %144 : vector<32x8xf32>
    %146 = vector.extract_strided_slice %140 {offsets = [1, 0], sizes = [31, 1], strides = [1, 1]} : vector<32x1xf32> to vector<31x1xf32>
    %cst_49 = arith.constant 0.000000e+00 : f32
    %147 = vector.broadcast %cst_49 : f32 to vector<1x1xf32>
    %148 = tpu.concatenate %146, %147 in 0 : vector<31x1xf32>, vector<1x1xf32> -> vector<32x1xf32>
    %149 = vector.extract_strided_slice %0 {offsets = [15, 0], sizes = [1, 8], strides = [1, 1]} : vector<16x8xf32> to vector<1x8xf32>
    %150 = vector.broadcast %148 : vector<32x1xf32> to vector<32x8xf32>
    %151 = vector.broadcast %149 : vector<1x8xf32> to vector<32x8xf32>
    %152 = arith.mulf %150, %151 : vector<32x8xf32>
    %153 = arith.addf %145, %152 : vector<32x8xf32>
    %154 = arith.negf %153 : vector<32x8xf32>
    %155 = math.exp %154 : vector<32x8xf32>
    %cst_50 = arith.constant 1.000000e+00 : f32
    %156 = vector.broadcast %cst_50 : f32 to vector<32x8xf32>
    %157 = arith.addf %156, %155 : vector<32x8xf32>
    %158 = arith.divf %156, %157 : vector<32x8xf32>
    %c0_51 = arith.constant 0 : index
    %c0_52 = arith.constant 0 : index
    %c0_53 = arith.constant 0 : index
    %c0_54 = arith.constant 0 : index
    %159 = vector.load %arg1[%c0_51, %c0_52, %c0_53, %c0_54] : memref<1x8x32x256xf32, #tpu.memory_space<vmem>>, vector<1x1x32x256xf32>
    %160 = vector.shape_cast %159 : vector<1x1x32x256xf32> to vector<32x256xf32>
    %161 = vector.extract_strided_slice %158 {offsets = [0, 0], sizes = [32, 1], strides = [1, 1]} : vector<32x8xf32> to vector<32x1xf32>
    %162 = vector.broadcast %161 : vector<32x1xf32> to vector<32x256xf32>
    %163 = arith.mulf %160, %162 : vector<32x256xf32>
    %c0_55 = arith.constant 0 : index
    %c1_56 = arith.constant 1 : index
    %c0_57 = arith.constant 0 : index
    %c0_58 = arith.constant 0 : index
    %164 = vector.load %arg1[%c0_55, %c1_56, %c0_57, %c0_58] : memref<1x8x32x256xf32, #tpu.memory_space<vmem>>, vector<1x1x32x256xf32>
    %165 = vector.shape_cast %164 : vector<1x1x32x256xf32> to vector<32x256xf32>
    %166 = vector.extract_strided_slice %158 {offsets = [0, 1], sizes = [32, 1], strides = [1, 1]} : vector<32x8xf32> to vector<32x1xf32>
    %167 = vector.broadcast %166 : vector<32x1xf32> to vector<32x256xf32>
    %168 = arith.mulf %165, %167 : vector<32x256xf32>
    %169 = arith.addf %163, %168 : vector<32x256xf32>
    %c0_59 = arith.constant 0 : index
    %c2_60 = arith.constant 2 : index
    %c0_61 = arith.constant 0 : index
    %c0_62 = arith.constant 0 : index
    %170 = vector.load %arg1[%c0_59, %c2_60, %c0_61, %c0_62] : memref<1x8x32x256xf32, #tpu.memory_space<vmem>>, vector<1x1x32x256xf32>
    %171 = vector.shape_cast %170 : vector<1x1x32x256xf32> to vector<32x256xf32>
    %172 = vector.extract_strided_slice %158 {offsets = [0, 2], sizes = [32, 1], strides = [1, 1]} : vector<32x8xf32> to vector<32x1xf32>
    %173 = vector.broadcast %172 : vector<32x1xf32> to vector<32x256xf32>
    %174 = arith.mulf %171, %173 : vector<32x256xf32>
    %175 = arith.addf %169, %174 : vector<32x256xf32>
    %c0_63 = arith.constant 0 : index
    %c3_64 = arith.constant 3 : index
    %c0_65 = arith.constant 0 : index
    %c0_66 = arith.constant 0 : index
    %176 = vector.load %arg1[%c0_63, %c3_64, %c0_65, %c0_66] : memref<1x8x32x256xf32, #tpu.memory_space<vmem>>, vector<1x1x32x256xf32>
    %177 = vector.shape_cast %176 : vector<1x1x32x256xf32> to vector<32x256xf32>
    %178 = vector.extract_strided_slice %158 {offsets = [0, 3], sizes = [32, 1], strides = [1, 1]} : vector<32x8xf32> to vector<32x1xf32>
    %179 = vector.broadcast %178 : vector<32x1xf32> to vector<32x256xf32>
    %180 = arith.mulf %177, %179 : vector<32x256xf32>
    %181 = arith.addf %175, %180 : vector<32x256xf32>
    %c0_67 = arith.constant 0 : index
    %c4_68 = arith.constant 4 : index
    %c0_69 = arith.constant 0 : index
    %c0_70 = arith.constant 0 : index
    %182 = vector.load %arg1[%c0_67, %c4_68, %c0_69, %c0_70] : memref<1x8x32x256xf32, #tpu.memory_space<vmem>>, vector<1x1x32x256xf32>
    %183 = vector.shape_cast %182 : vector<1x1x32x256xf32> to vector<32x256xf32>
    %184 = vector.extract_strided_slice %158 {offsets = [0, 4], sizes = [32, 1], strides = [1, 1]} : vector<32x8xf32> to vector<32x1xf32>
    %185 = vector.broadcast %184 : vector<32x1xf32> to vector<32x256xf32>
    %186 = arith.mulf %183, %185 : vector<32x256xf32>
    %187 = arith.addf %181, %186 : vector<32x256xf32>
    %c0_71 = arith.constant 0 : index
    %c5_72 = arith.constant 5 : index
    %c0_73 = arith.constant 0 : index
    %c0_74 = arith.constant 0 : index
    %188 = vector.load %arg1[%c0_71, %c5_72, %c0_73, %c0_74] : memref<1x8x32x256xf32, #tpu.memory_space<vmem>>, vector<1x1x32x256xf32>
    %189 = vector.shape_cast %188 : vector<1x1x32x256xf32> to vector<32x256xf32>
    %190 = vector.extract_strided_slice %158 {offsets = [0, 5], sizes = [32, 1], strides = [1, 1]} : vector<32x8xf32> to vector<32x1xf32>
    %191 = vector.broadcast %190 : vector<32x1xf32> to vector<32x256xf32>
    %192 = arith.mulf %189, %191 : vector<32x256xf32>
    %193 = arith.addf %187, %192 : vector<32x256xf32>
    %c0_75 = arith.constant 0 : index
    %c6_76 = arith.constant 6 : index
    %c0_77 = arith.constant 0 : index
    %c0_78 = arith.constant 0 : index
    %194 = vector.load %arg1[%c0_75, %c6_76, %c0_77, %c0_78] : memref<1x8x32x256xf32, #tpu.memory_space<vmem>>, vector<1x1x32x256xf32>
    %195 = vector.shape_cast %194 : vector<1x1x32x256xf32> to vector<32x256xf32>
    %196 = vector.extract_strided_slice %158 {offsets = [0, 6], sizes = [32, 1], strides = [1, 1]} : vector<32x8xf32> to vector<32x1xf32>
    %197 = vector.broadcast %196 : vector<32x1xf32> to vector<32x256xf32>
    %198 = arith.mulf %195, %197 : vector<32x256xf32>
    %199 = arith.addf %193, %198 : vector<32x256xf32>
    %c0_79 = arith.constant 0 : index
    %c7_80 = arith.constant 7 : index
    %c0_81 = arith.constant 0 : index
    %c0_82 = arith.constant 0 : index
    %200 = vector.load %arg1[%c0_79, %c7_80, %c0_81, %c0_82] : memref<1x8x32x256xf32, #tpu.memory_space<vmem>>, vector<1x1x32x256xf32>
    %201 = vector.shape_cast %200 : vector<1x1x32x256xf32> to vector<32x256xf32>
    %202 = vector.extract_strided_slice %158 {offsets = [0, 7], sizes = [32, 1], strides = [1, 1]} : vector<32x8xf32> to vector<32x1xf32>
    %203 = vector.broadcast %202 : vector<32x1xf32> to vector<32x256xf32>
    %204 = arith.mulf %201, %203 : vector<32x256xf32>
    %205 = arith.addf %199, %204 : vector<32x256xf32>
    %c0_83 = arith.constant 0 : index
    %c0_84 = arith.constant 0 : index
    %c0_85 = arith.constant 0 : index
    %206 = vector.load %arg3[%c0_83, %c0_84, %c0_85] : memref<1x32x256xf32, #tpu.memory_space<vmem>>, vector<1x32x256xf32>
    %207 = vector.shape_cast %206 : vector<1x32x256xf32> to vector<32x256xf32>
    %208 = vector.shape_cast %205 : vector<32x256xf32> to vector<1x32x256xf32>
    tpu.vector_store %arg3[%c0_83, %c0_84, %c0_85], %208 {strides = array<i32>} : memref<1x32x256xf32, #tpu.memory_space<vmem>>, vector<1x32x256xf32>,
    return
  }
  func.func @transform_0(%arg0: i32) -> (i32, i32, i32, i32) {
    %c0_i32 = arith.constant 0 : i32
    %c0_i32_0 = arith.constant 0 : i32
    %c0_i32_1 = arith.constant 0 : i32
    %c0_i32_2 = arith.constant 0 : i32
    return %arg0, %c0_i32, %c0_i32_0, %c0_i32_1 : i32, i32, i32, i32
  }
  func.func @transform_1(%arg0: i32) -> (i32, i32) {
    %c0_i32 = arith.constant 0 : i32
    %c0_i32_0 = arith.constant 0 : i32
    %c0_i32_1 = arith.constant 0 : i32
    return %c0_i32, %c0_i32_0 : i32, i32
  }
  func.func @transform_2(%arg0: i32) -> (i32, i32, i32) {
    %c0_i32 = arith.constant 0 : i32
    %c0_i32_0 = arith.constant 0 : i32
    %c0_i32_1 = arith.constant 0 : i32
    return %arg0, %c0_i32, %c0_i32_0 : i32, i32, i32
  }
}

</mosaic_0001>

<bundles_post_ra>
// kernel: taid_decoding.1
= control target key start
LH: loop header
LB: loop body
LE: loop exit
PB: predicated region body
PF: predicated region fallthrough
CT: control target
= control target key end

     0   :  { %s1333_s9 = smov 0   ;;  %s1752_s0 = inlined_call_operand.vmem [shape: f32[2,8,32,256], index: 0, kind: input, shape index: {}]   ;;  %s1753_s1 = inlined_call_operand.vmem [shape: f32[16,8], index: 1, kind: input, shape index: {}]   ;;  %s1754_s2 = inlined_call_operand.vmem [shape: f32[2,32,256], index: 2, kind: output, shape index: {}]  }
   0x1 LB: > { %s1117_s10 = sadd.s32 4294967295, %s1308_s9   ;;  %p1121_p0 = scmp.ge.s32.totalorder %s1308_s9, 1  ;;  %s1308_s9 = sphi %s1333_s9, %s12_s9  }
   0x2   : > { %p112_p1 = scmp.lt.s32.totalorder %s1308_s9, 3 }
   0x4   : > { %p113_p2 = pnand %p1121_p0, %p112_p1 }
   0x5   : > { %p134_p3 = scmp.lt.s32.totalorder (!%p113_p2), %s1117_s10, 1  ;;  %v1310_v46 = vmov (!%p113_p2), 0   ;;  %vm186_vm0 = vcmask (!%p113_p2), 1046528  }
   0x6   : > { %116 = sbr.rel (%p113_p2) target bundleno = 617 (0x269), region = 28  ;;  %1207 = vset.pattern.permute.xlu1 (!%p113_p2), %v1310_v46  ;;  %1206 = vset.pattern.permute.xlu0 (!%p113_p2), %v1310_v46 }
   0xd   : > { %s1756_s10 = smov (!%p134_p3, %s1117_s10), 1 }
   0xe   : > { %s1188_s11 = sshll.u32 %s1756_s10, 9  ;;  %s1189_s19 = sshll.u32 %s1756_s10, 6 }
   0xf   : > { %s1347_s14 = scalar_lea.vmem %s1752_s0, %s1188_s11  ;;  %s1703_s22 = scalar_lea.vmem %s1754_s2, %s1189_s19 }
  0x10   : > { %v150_v0 = vld [vmem:[%s1347_s14 + $0x20] sm:$0xff]  ;;  %v151_v1 = vld [vmem:[%s1347_s14 + $0x28] sm:$0xff]  ;;  %v152_v5 = vld [vmem:[%s1347_s14 + $0x30] sm:$0xff] }
  0x11   : > { %v146_v2 = vld [vmem:[%s1347_s14] sm:$0xff]  ;;  %v160_v3 = vadd.f32 %v151_v1, %v150_v0  ;;  %v147_v4 = vld [vmem:[%s1347_s14 + $0x8] sm:$0xff]  ;;  %v153_v6 = vld [vmem:[%s1347_s14 + $0x38] sm:$0xff] }
  0x12   : > { %v154_v7 = vadd.f32 %v147_v4, %v146_v2  ;;  %v148_v8 = vld [vmem:[%s1347_s14 + $0x10] sm:$0xff]  ;;  %v149_v9 = vld [vmem:[%s1347_s14 + $0x18] sm:$0xff]  ;;  %v163_v10 = vadd.f32 %v153_v6, %v152_v5  ;;  %v1126_v12 = vld [vmem:[%s1347_s14 + $0x40] sm:$0xff] }
  0x13   : > { %161 = vadd.xlane.f32.xlu1 %v160_v3  ;;  %v157_v11 = vadd.f32 %v149_v9, %v148_v8  ;;  %v1127_v13 = vld [vmem:[%s1347_s14 + $0x48] sm:$0xff]  ;;  %v1128_v14 = vld [vmem:[%s1347_s14 + $0x50] sm:$0xff]  ;;  %v1129_v15 = vld [vmem:[%s1347_s14 + $0x58] sm:$0xff] }
  0x14   : > { %155 = vadd.xlane.f32.xlu0 %v154_v7  ;;  %v234_v16 = vadd.f32 %v1127_v13, %v1126_v12  ;;  %v1130_v17 = vld [vmem:[%s1347_s14 + $0x60] sm:$0xff]  ;;  %v1131_v18 = vld [vmem:[%s1347_s14 + $0x68] sm:$0xff]  ;;  %v237_v19 = vadd.f32 %v1129_v15, %v1128_v14  ;;  %v1136_v20 = vld [vmem:[%s1347_s14 + $0x90] sm:$0xff] }
  0x15   : > { %v1137_v21 = vld [vmem:[%s1347_s14 + $0x98] sm:$0xff]  ;;  %v240_v22 = vadd.f32 %v1131_v18, %v1130_v17  ;;  %v1132_v23 = vld [vmem:[%s1347_s14 + $0x70] sm:$0xff]  ;;  %v1138_v26 = vld [vmem:[%s1347_s14 + $0xa0] sm:$0xff] }
  0x16   : > { %v1133_v24 = vld [vmem:[%s1347_s14 + $0x78] sm:$0xff]  ;;  %v316_v25 = vadd.f32 %v1137_v21, %v1136_v20  ;;  %v1139_v27 = vld [vmem:[%s1347_s14 + $0xa8] sm:$0xff]  ;;  %v1134_v29 = vld [vmem:[%s1347_s14 + $0x80] sm:$0xff] }
  0x17   : > { %164 = vadd.xlane.f32.xlu1 %v163_v10  ;;  %v243_v28 = vadd.f32 %v1133_v24, %v1132_v23  ;;  %v1135_v30 = vld [vmem:[%s1347_s14 + $0x88] sm:$0xff]  ;;  %v319_v31 = vadd.f32 %v1139_v27, %v1138_v26  ;;  %v1144_v32 = vld [vmem:[%s1347_s14 + $0xd0] sm:$0xff]  ;;  %v1145_v33 = vld [vmem:[%s1347_s14 + $0xd8] sm:$0xff] }
  0x18   : > { %158 = vadd.xlane.f32.xlu0 %v157_v11  ;;  %v313_v34 = vadd.f32 %v1135_v30, %v1134_v29  ;;  %v1140_v35 = vld [vmem:[%s1347_s14 + $0xb0] sm:$0xff]  ;;  %v1141_v36 = vld [vmem:[%s1347_s14 + $0xb8] sm:$0xff]  ;;  %v395_v37 = vadd.f32 %v1145_v33, %v1144_v32  ;;  %v1146_v38 = vld [vmem:[%s1347_s14 + $0xe0] sm:$0xff] }
  0x19   : > { %v1147_v39 = vld [vmem:[%s1347_s14 + $0xe8] sm:$0xff]  ;;  %v322_v40 = vadd.f32 %v1141_v36, %v1140_v35  ;;  %v1142_v41 = vld [vmem:[%s1347_s14 + $0xc0] sm:$0xff]  ;;  %v1152_v44 = vld [vmem:[%s1347_s14 + $0x110] sm:$0xff] }
  0x1a   : > { %v1143_v42 = vld [vmem:[%s1347_s14 + $0xc8] sm:$0xff]  ;;  %v398_v43 = vadd.f32 %v1147_v39, %v1146_v38  ;;  %v1153_v45 = vld [vmem:[%s1347_s14 + $0x118] sm:$0xff]  ;;  %v1148_v48 = vld [vmem:[%s1347_s14 + $0xf0] sm:$0xff] }
  0x1b   : > { %235 = vadd.xlane.f32.xlu1 %v234_v16  ;;  %v392_v47 = vadd.f32 %v1143_v42, %v1142_v41  ;;  %v1149_v49 = vld [vmem:[%s1347_s14 + $0xf8] sm:$0xff]  ;;  %v474_v50 = vadd.f32 %v1153_v45, %v1152_v44  ;;  %v1154_v51 = vld [vmem:[%s1347_s14 + $0x120] sm:$0xff]  ;;  %v1155_v52 = vld [vmem:[%s1347_s14 + $0x128] sm:$0xff] }
  0x1c   : > { %238 = vadd.xlane.f32.xlu0 %v237_v19  ;;  %v401_v53 = vadd.f32 %v1149_v49, %v1148_v48  ;;  %v1150_v54 = vld [vmem:[%s1347_s14 + $0x100] sm:$0xff]  ;;  %v1151_v55 = vld [vmem:[%s1347_s14 + $0x108] sm:$0xff]  ;;  %v477_v56 = vadd.f32 %v1155_v52, %v1154_v51  ;;  %v1160_v57 = vld [vmem:[%s1347_s14 + $0x150] sm:$0xff] }
  0x1d   : > { %v1161_v58 = vld [vmem:[%s1347_s14 + $0x158] sm:$0xff]  ;;  %v471_v59 = vadd.f32 %v1151_v55, %v1150_v54  ;;  %v1156_v60 = vld [vmem:[%s1347_s14 + $0x130] sm:$0xff]  ;;  %v1162_v63 = vld [vmem:[%s1347_s14 + $0x160] sm:$0xff] }
  0x1e   : > { %v1157_v61 = vld [vmem:[%s1347_s14 + $0x138] sm:$0xff]  ;;  %v553_v62 = vadd.f32 %v1161_v58, %v1160_v57  ;;  %v1163_v0 = vld [vmem:[%s1347_s14 + $0x168] sm:$0xff]  ;;  %v1158_v2 = vld [vmem:[%s1347_s14 + $0x140] sm:$0xff] }
  0x1f   : > { %241 = vadd.xlane.f32.xlu1 %v240_v22  ;;  %v480_v1 = vadd.f32 %v1157_v61, %v1156_v60  ;;  %v1159_v3 = vld [vmem:[%s1347_s14 + $0x148] sm:$0xff]  ;;  %v556_v4 = vadd.f32 %v1163_v0, %v1162_v63  ;;  %v1176_v5 = vld [vmem:[%s1347_s14 + $0x1d0] sm:$0xff]  ;;  %v1177_v6 = vld [vmem:[%s1347_s14 + $0x1d8] sm:$0xff] }
  0x20   : > { %317 = vadd.xlane.f32.xlu0 %v316_v25  ;;  %v550_v7 = vadd.f32 %v1159_v3, %v1158_v2  ;;  %v1164_v8 = vld [vmem:[%s1347_s14 + $0x170] sm:$0xff]  ;;  %v1165_v9 = vld [vmem:[%s1347_s14 + $0x178] sm:$0xff]  ;;  %v711_v10 = vadd.f32 %v1177_v6, %v1176_v5  ;;  %v1166_v12 = vld [vmem:[%s1347_s14 + $0x180] sm:$0xff] }
  0x21   : > { %v559_v11 = vadd.f32 %v1165_v9, %v1164_v8  ;;  %v1167_v13 = vld [vmem:[%s1347_s14 + $0x188] sm:$0xff]  ;;  %v1168_v15 = vld [vmem:[%s1347_s14 + $0x190] sm:$0xff]  ;;  %v1169_v16 = vld [vmem:[%s1347_s14 + $0x198] sm:$0xff] }
  0x22   : > { %v629_v14 = vadd.f32 %v1167_v13, %v1166_v12  ;;  %v632_v17 = vadd.f32 %v1169_v16, %v1168_v15  ;;  %v1170_v18 = vld [vmem:[%s1347_s14 + $0x1a0] sm:$0xff]  ;;  %v1171_v19 = vld [vmem:[%s1347_s14 + $0x1a8] sm:$0xff]  ;;  %v1172_v21 = vld [vmem:[%s1347_s14 + $0x1b0] sm:$0xff] }
  0x23   : > { %244 = vadd.xlane.f32.xlu1 %v243_v28  ;;  %v635_v20 = vadd.f32 %v1171_v19, %v1170_v18  ;;  %v1173_v22 = vld [vmem:[%s1347_s14 + $0x1b8] sm:$0xff]  ;;  %v1174_v24 = vld [vmem:[%s1347_s14 + $0x1c0] sm:$0xff]  ;;  %v1175_v25 = vld [vmem:[%s1347_s14 + $0x1c8] sm:$0xff] }
  0x24   : > { %320 = vadd.xlane.f32.xlu0 %v319_v31  ;;  %v638_v23 = vadd.f32 %v1173_v22, %v1172_v21  ;;  %v708_v26 = vadd.f32 %v1175_v25, %v1174_v24  ;;  %v1178_v27 = vld [vmem:[%s1347_s14 + $0x1e0] sm:$0xff]  ;;  %v1179_v28 = vld [vmem:[%s1347_s14 + $0x1e8] sm:$0xff]  ;;  %v1180_v30 = vld [vmem:[%s1347_s14 + $0x1f0] sm:$0xff] }
  0x25   : > { %v714_v29 = vadd.f32 %v1179_v28, %v1178_v27  ;;  %v1181_v31 = vld [vmem:[%s1347_s14 + $0x1f8] sm:$0xff] }
  0x26   : > { %v717_v32 = vadd.f32 %v1181_v31, %v1180_v30 }
  0x27   : > { %314 = vadd.xlane.f32.xlu1 %v313_v34 }
  0x28   : > { %396 = vadd.xlane.f32.xlu0 %v395_v37 }
  0x2b   : > { %323 = vadd.xlane.f32.xlu1 %v322_v40 }
  0x2c   : > { %399 = vadd.xlane.f32.xlu0 %v398_v43 }
  0x2f   : > { %393 = vadd.xlane.f32.xlu1 %v392_v47 }
  0x30   : > { %475 = vadd.xlane.f32.xlu0 %v474_v50 }
  0x33   : > { %402 = vadd.xlane.f32.xlu1 %v401_v53 }
  0x34   : > { %478 = vadd.xlane.f32.xlu0 %v477_v56 }
  0x37   : > { %472 = vadd.xlane.f32.xlu1 %v471_v59 }
  0x38   : > { %554 = vadd.xlane.f32.xlu0 %v553_v62 }
  0x3b   : > { %481 = vadd.xlane.f32.xlu1 %v480_v1 }
  0x3c   : > { %557 = vadd.xlane.f32.xlu0 %v556_v4 }
  0x3f   : > { %551 = vadd.xlane.f32.xlu1 %v550_v7 }
  0x40   : > { %712 = vadd.xlane.f32.xlu0 %v711_v10 }
  0x43   : > { %560 = vadd.xlane.f32.xlu1 %v559_v11 }
  0x47   : > { %630 = vadd.xlane.f32.xlu1 %v629_v14 }
  0x4b   : > { %633 = vadd.xlane.f32.xlu1 %v632_v17 }
  0x4f   : > { %636 = vadd.xlane.f32.xlu1 %v635_v20 }
  0x53   : > { %639 = vadd.xlane.f32.xlu1 %v638_v23 }
  0x57   : > { %709 = vadd.xlane.f32.xlu1 %v708_v26 }
  0x5b   : > { %715 = vadd.xlane.f32.xlu1 %v714_v29 }
  0x5f   : > { %718 = vadd.xlane.f32.xlu1 %v717_v32 }
  0xa0   : > { %v162_v33 = vpop.xlane.xlu1 %161 }
  0xa1   : > { %v156_v34 = vpop.xlane.xlu0 %155  ;;  %v1413_v35 = vmul.f32 0.00390625, %v162_v33 }
  0xa2   : > { %v1415_v36 = vmul.f32 0.00390625, %v156_v34 }
  0xa3   : > { %v190_v39 = vrot.slane %v1413_v35, 1 }
  0xa4   : > { %v165_v37 = vpop.xlane.xlu1 %164  ;;  %v187_v42 = vrot.slane %v1415_v36, 1 }
  0xa5   : > { %v159_v38 = vpop.xlane.xlu0 %158  ;;  %v1418_v40 = vmul.f32 0.00390625, %v165_v37 }
  0xa6   : > { %v1420_v41 = vmul.f32 0.00390625, %v159_v38 }
  0xa7   : > { %v192_v46 = vrot.slane %v1418_v40, 1 }
  0xa8   : > { %v188_v43 = vrot.slane %v1420_v41, 1  ;;  %v236_v44 = vpop.xlane.xlu1 %235 }
  0xa9   : > { %v239_v45 = vpop.xlane.xlu0 %238  ;;  %v1432_v54 = vmul.f32 0.00390625, %v236_v44  ;;  %v193_v55 = vsel %vm186_vm0, %v190_v39, %v192_v46  ;;  %v195_v63 = vsel %vm186_vm0, %v192_v46, 0.0 }
  0xaa   : > { %v191_v47 = vsel %vm186_vm0, %v188_v43, %v190_v39  ;;  %v189_v48 = vsel %vm186_vm0, %v187_v42, %v188_v43  ;;  %v1427_v49 = vmul.f32 0.00390625, %v239_v45 }
  0xab   : > { %201 = vperm.xlu1 %1207, %v191_v47   ;;  %197 = vperm.xlu0 %1206, %v189_v48   ;;  %v266_v61 = vrot.slane %v1432_v54, 1 }
  0xac   : > { %v242_v50 = vpop.xlane.xlu1 %241  ;;  %v267_v52 = vrot.slane %v1427_v49, 1 }
  0xad   : > { %v1429_v51 = vmul.f32 0.00390625, %v242_v50  ;;  %v318_v53 = vpop.xlane.xlu0 %317 }
  0xae   : > { %v1437_v59 = vmul.f32 0.00390625, %v318_v53  ;;  %v268_v5 = vsel %vm186_vm0, %v266_v61, %v267_v52 }
  0xaf   : > { %v269_v56 = vrot.slane %v1429_v51, 1  ;;  %205 = vperm.xlu1 %1207, %v193_v55  }
  0xb0   : > { %v245_v57 = vpop.xlane.xlu1 %244  ;;  %v346_v2 = vrot.slane %v1437_v59, 1 }
  0xb1   : > { %v270_v58 = vsel %vm186_vm0, %v267_v52, %v269_v56  ;;  %v321_v60 = vpop.xlane.xlu0 %320  ;;  %v1440_v62 = vmul.f32 0.00390625, %v245_v57 }
  0xb2   : > { %280 = vperm.xlu0 %1206, %v270_v58   ;;  %v1454_v12 = vmul.f32 0.00390625, %v321_v60 }
  0xb3   : > { %210 = vperm.xlu1 %1207, %v195_v63   ;;  %v271_v4 = vrot.slane %v1440_v62, 1 }
  0xb4   : > { %v315_v0 = vpop.xlane.xlu1 %314  ;;  %v348_v20 = vrot.slane %v1454_v12, 1 }
  0xb5   : > { %v1443_v1 = vmul.f32 0.00390625, %v315_v0  ;;  %v397_v3 = vpop.xlane.xlu0 %396  ;;  %v272_v13 = vsel %vm186_vm0, %v269_v56, %v271_v4  ;;  %v274_v21 = vsel %vm186_vm0, %v271_v4, 0.0 }
  0xb6   : > { %v1452_v10 = vmul.f32 0.00390625, %v397_v3  ;;  %v349_v29 = vsel %vm186_vm0, %v346_v2, %v348_v20 }
  0xb7   : > { %v345_v6 = vrot.slane %v1443_v1, 1  ;;  %276 = vperm.xlu1 %1207, %v268_v5  }
  0xb8   : > { %v324_v7 = vpop.xlane.xlu1 %323  ;;  %v425_v17 = vrot.slane %v1452_v10, 1 }
  0xb9   : > { %v1449_v8 = vmul.f32 0.00390625, %v324_v7  ;;  %v347_v9 = vsel %vm186_vm0, %v345_v6, %v346_v2  ;;  %v400_v11 = vpop.xlane.xlu0 %399 }
  0xba   : > { %355 = vperm.xlu0 %1206, %v347_v9   ;;  %v1470_v28 = vmul.f32 0.00390625, %v400_v11 }
  0xbb   : > { %284 = vperm.xlu1 %1207, %v272_v13   ;;  %v350_v14 = vrot.slane %v1449_v8, 1 }
  0xbc   : > { %v394_v15 = vpop.xlane.xlu1 %393  ;;  %v427_v37 = vrot.slane %v1470_v28, 1 }
  0xbd   : > { %v1458_v16 = vmul.f32 0.00390625, %v394_v15  ;;  %v353_v18 = vsel %vm186_vm0, %v350_v14, 0.0  ;;  %v476_v19 = vpop.xlane.xlu0 %475  ;;  %v351_v38 = vsel %vm186_vm0, %v348_v20, %v350_v14 }
  0xbe   : > { %368 = vperm.xlu0 %1206, %v353_v18   ;;  %v1468_v26 = vmul.f32 0.00390625, %v476_v19  ;;  %v428_v48 = vsel %vm186_vm0, %v425_v17, %v427_v37 }
  0xbf   : > { %v424_v22 = vrot.slane %v1458_v16, 1  ;;  %289 = vperm.xlu1 %1207, %v274_v21  }
  0xc0   : > { %v403_v23 = vpop.xlane.xlu1 %402  ;;  %v504_v33 = vrot.slane %v1468_v26, 1 }
  0xc1   : > { %v1465_v24 = vmul.f32 0.00390625, %v403_v23  ;;  %v426_v25 = vsel %vm186_vm0, %v424_v22, %v425_v17  ;;  %v479_v27 = vpop.xlane.xlu0 %478 }
  0xc2   : > { %434 = vperm.xlu0 %1206, %v426_v25   ;;  %v1486_v47 = vmul.f32 0.00390625, %v479_v27 }
  0xc3   : > { %359 = vperm.xlu1 %1207, %v349_v29   ;;  %v429_v30 = vrot.slane %v1465_v24, 1 }
  0xc4   : > { %v473_v31 = vpop.xlane.xlu1 %472  ;;  %v506_v57 = vrot.slane %v1486_v47, 1 }
  0xc5   : > { %v1474_v32 = vmul.f32 0.00390625, %v473_v31  ;;  %v432_v34 = vsel %vm186_vm0, %v429_v30, 0.0  ;;  %v555_v39 = vpop.xlane.xlu0 %554  ;;  %v430_v58 = vsel %vm186_vm0, %v427_v37, %v429_v30 }
  0xc6   : > { %447 = vperm.xlu0 %1206, %v432_v34   ;;  %v1484_v46 = vmul.f32 0.00390625, %v555_v39  ;;  %v507_v3 = vsel %vm186_vm0, %v504_v33, %v506_v57 }
  0xc7   : > { %v503_v42 = vrot.slane %v1474_v32, 1  ;;  %363 = vperm.xlu1 %1207, %v351_v38  }
  0xc8   : > { %v482_v43 = vpop.xlane.xlu1 %481  ;;  %v583_v55 = vrot.slane %v1484_v46, 1 }
  0xc9   : > { %v1481_v44 = vmul.f32 0.00390625, %v482_v43  ;;  %v505_v45 = vsel %vm186_vm0, %v503_v42, %v504_v33  ;;  %v558_v61 = vpop.xlane.xlu0 %557 }
  0xca   : > { %513 = vperm.xlu0 %1206, %v505_v45   ;;  %v1498_v2 = vmul.f32 0.00390625, %v558_v61 }
  0xcb   : > { %438 = vperm.xlu1 %1207, %v428_v48   ;;  %v508_v50 = vrot.slane %v1481_v44, 1 }
  0xcc   : > { %v552_v52 = vpop.xlane.xlu1 %551  ;;  %v585_v7 = vrot.slane %v1498_v2, 1 }
  0xcd   : > { %v1490_v53 = vmul.f32 0.00390625, %v552_v52  ;;  %v511_v56 = vsel %vm186_vm0, %v508_v50, 0.0  ;;  %v509_v9 = vsel %vm186_vm0, %v506_v57, %v508_v50  ;;  %v713_v31 = vpop.xlane.xlu0 %712 }
  0xce   : > { %526 = vperm.xlu0 %1206, %v511_v56   ;;  %v586_v17 = vsel %vm186_vm0, %v583_v55, %v585_v7  ;;  %v1525_v39 = vmul.f32 0.00390625, %v713_v31 }
  0xcf   : > { %v582_v60 = vrot.slane %v1490_v53, 1  ;;  %442 = vperm.xlu1 %1207, %v430_v58  }
  0xd0   : > { %v561_v63 = vpop.xlane.xlu1 %560  ;;  %v741_v50 = vrot.slane %v1525_v39, 1 }
  0xd1   : > { %v584_v0 = vsel %vm186_vm0, %v582_v60, %v583_v55  ;;  %v1503_v6 = vmul.f32 0.00390625, %v561_v63 }
  0xd2   : > { %592 = vperm.xlu0 %1206, %v584_v0   ;;  %v170_v0 = vlaneseq }
  0xd3   : > { %517 = vperm.xlu1 %1207, %v507_v3   ;;  %v587_v15 = vrot.slane %v1503_v6, 1 }
  0xd4   : > { %v631_v4 = vpop.xlane.xlu1 %630  ;;  %v1541_v3 = vshrl.u32 %v170_v0, 7 }
  0xd5   : > { %v1501_v5 = vmul.f32 0.00390625, %v631_v4  ;;  %v588_v22 = vsel %vm186_vm0, %v585_v7, %v587_v15  ;;  %v590_v29 = vsel %vm186_vm0, %v587_v15, 0.0  ;;  %v1547_v7 = vld [vmem:[%s1753_s1] sm:$0xff] }
  0xd6   : > { %v172_v4 = vsub.s32 0, %v1541_v3 }
  0xd7   : > { %521 = vperm.xlu1 %1207, %v509_v9   ;;  %v661_v13 = vrot.slane %v1501_v5, 1  ;;  %v1552_v9 = vld [vmem:[%s1753_s1 + $0x8] sm:$0xff] }
  0xd8   : > { %v634_v11 = vpop.xlane.xlu1 %633  ;;  %v216_v15 = vrot.slane %v1552_v9, %v172_v4 }
  0xd9   : > { %v1508_v14 = vmul.f32 0.00390625, %v634_v11  ;;  %v252_v11 = vsub.s32 1, %v1541_v3 }
  0xdb   : > { %v662_v18 = vrot.slane %v1508_v14, 1  ;;  %596 = vperm.xlu1 %1207, %v586_v17   ;;  %v253_v17 = vrot.slane %v1547_v7, %v252_v11 }
  0xdc   : > { %v637_v19 = vpop.xlane.xlu1 %636 }
  0xdd   : > { %v663_v20 = vsel %vm186_vm0, %v661_v13, %v662_v18  ;;  %v1514_v21 = vmul.f32 0.00390625, %v637_v19  ;;  %v173_v13 = vrot.slane %v1547_v7, %v172_v4  ;;  %v255_v31 = vmul.f32 %v253_v17, %v1427_v49 }
  0xde   : > { %671 = vperm.xlu0 %1206, %v663_v20   ;;  %v410_v4 = vsub.s32 3, %v1541_v3 }
  0xdf   : > { %600 = vperm.xlu1 %1207, %v588_v22   ;;  %v664_v25 = vrot.slane %v1514_v21, 1  ;;  %v174_v20 = vmul.f32 %v173_v13, %v1415_v36  ;;  %v175_v22 = vmul.f32 %v173_v13, %v1420_v41  ;;  %v177_v49 = vmul.f32 %v173_v13, %v1418_v40 }
  0xe0   : > { %v640_v23 = vpop.xlane.xlu1 %639  ;;  %v411_v40 = vrot.slane %v1547_v7, %v410_v4 }
  0xe1   : > { %v1518_v27 = vmul.f32 0.00390625, %v640_v23  ;;  %v665_v34 = vsel %vm186_vm0, %v662_v18, %v664_v25 }
  0xe3   : > { %605 = vperm.xlu1 %1207, %v590_v29   ;;  %v666_v33 = vrot.slane %v1518_v27, 1  ;;  %v331_v29 = vsub.s32 2, %v1541_v3 }
  0xe4   : > { %v710_v30 = vpop.xlane.xlu1 %709 }
  0xe5   : > { %v1523_v37 = vmul.f32 0.00390625, %v710_v30  ;;  %v667_v43 = vsel %vm186_vm0, %v664_v25, %v666_v33  ;;  %v669_v56 = vsel %vm186_vm0, %v666_v33, 0.0  ;;  %v254_v30 = vmul.f32 %v253_v17, %v1432_v54 }
  0xe6   : > { %v332_v41 = vrot.slane %v1547_v7, %v331_v29 }
  0xe7   : > { %675 = vperm.xlu1 %1207, %v665_v34   ;;  %v740_v45 = vrot.slane %v1523_v37, 1 }
  0xe8   : > { %v716_v38 = vpop.xlane.xlu1 %715 }
  0xe9   : > { %v1527_v42 = vmul.f32 0.00390625, %v716_v38  ;;  %v742_v58 = vsel %vm186_vm0, %v740_v45, %v741_v50  ;;  %v176_v45 = vmul.f32 %v173_v13, %v1413_v35  ;;  %v257_v35 = vmul.f32 %v253_v17, %v1440_v62 }
  0xea   : > { %v489_v62 = vsub.s32 4, %v1541_v3 }
  0xeb   : > { %679 = vperm.xlu1 %1207, %v667_v43   ;;  %v743_v52 = vrot.slane %v1527_v42, 1  ;;  %v295_v43 = vrot.slane %v1552_v9, %v252_v11 }
  0xec   : > { %v719_v48 = vpop.xlane.xlu1 %718 }
  0xed   : > { %v1533_v55 = vmul.f32 0.00390625, %v719_v48  ;;  %v744_v61 = vsel %vm186_vm0, %v741_v50, %v743_v52 }
  0xef   : > { %v745_v57 = vrot.slane %v1533_v55, 1  ;;  %684 = vperm.xlu1 %1207, %v669_v56  }
  0xf1   : > { %v746_v60 = vsel %vm186_vm0, %v743_v52, %v745_v57  ;;  %v748_v63 = vsel %vm186_vm0, %v745_v57, 0.0  ;;  %v256_v52 = vmul.f32 %v253_v17, %v1429_v51  ;;  %v335_v17 = vmul.f32 %v332_v41, %v1454_v12 }
  0xf2   : > { %758 = vperm.xlu0 %1206, %v746_v60  }
  0xf3   : > { %750 = vperm.xlu1 %1207, %v742_v58  }
  0xf7   : > { %754 = vperm.xlu1 %1207, %v744_v61  }
  0xfb   : > { %763 = vperm.xlu1 %1207, %v748_v63   ;;  %v334_v63 = vmul.f32 %v332_v41, %v1437_v59 }
 0x12a   : > { %v202_v18 = vpop.permute.xlu1 %201  ;;  %v198_v19 = vpop.permute.xlu0 %197 }
 0x12b   : > { %v218_v23 = vmul.f32 %v216_v15, %v202_v18  ;;  %v217_v25 = vmul.f32 %v216_v15, %v198_v19  ;;  %v374_v19 = vrot.slane %v1552_v9, %v331_v29 }
 0x12d   : > { %v222_v33 = vadd.f32 %v218_v23, %v175_v22  ;;  %v221_v34 = vadd.f32 %v217_v25, %v174_v20  ;;  %v333_v23 = vmul.f32 %v332_v41, %v1443_v1  ;;  %v453_v1 = vrot.slane %v1552_v9, %v410_v4 }
 0x12e   : > { %v206_v38 = vpop.permute.xlu1 %205 }
 0x12f   : > { %v219_v48 = vmul.f32 %v216_v15, %v206_v38  ;;  %v259_v50 = vadd.f32 %v255_v31, %v222_v33  ;;  %v258_v36 = vadd.f32 %v254_v30, %v221_v34  ;;  %v412_v33 = vmul.f32 %v411_v40, %v1458_v16 }
 0x131   : > { %v223_v56 = vadd.f32 %v219_v48, %v176_v45  ;;  %v281_v57 = vpop.permute.xlu0 %280 }
 0x132   : > { %v211_v58 = vpop.permute.xlu1 %210  ;;  %v297_v54 = vmul.f32 %v295_v43, %v281_v57 }
 0x133   : > { %v220_v60 = vmul.f32 %v216_v15, %v211_v58  ;;  %v260_v61 = vadd.f32 %v256_v52, %v223_v56  ;;  %v490_v52 = vrot.slane %v1547_v7, %v489_v62  ;;  %v336_v56 = vmul.f32 %v332_v41, %v1449_v8 }
 0x134   : > { %v301_v0 = vadd.f32 %v297_v54, %v259_v50 }
 0x135   : > { %v224_v11 = vadd.f32 %v220_v60, %v177_v49 }
 0x136   : > { %v277_v18 = vpop.permute.xlu1 %276  ;;  %v338_v51 = vadd.f32 %v334_v63, %v301_v0  ;;  %v568_v63 = vsub.s32 5, %v1541_v3 }
 0x137   : > { %v296_v20 = vmul.f32 %v295_v43, %v277_v18  ;;  %v261_v22 = vadd.f32 %v257_v35, %v224_v11  ;;  %v415_v35 = vmul.f32 %v411_v40, %v1465_v24 }
 0x139   : > { %v300_v13 = vadd.f32 %v296_v20, %v258_v36  ;;  %v356_v15 = vpop.permute.xlu0 %355 }
 0x13a   : > { %v285_v25 = vpop.permute.xlu1 %284  ;;  %v375_v59 = vmul.f32 %v374_v19, %v356_v15 }
 0x13b   : > { %v298_v30 = vmul.f32 %v295_v43, %v285_v25  ;;  %v337_v31 = vadd.f32 %v333_v23, %v300_v13  ;;  %v414_v25 = vmul.f32 %v411_v40, %v1470_v28 }
 0x13d   : > { %v302_v29 = vadd.f32 %v298_v30, %v260_v61  ;;  %v379_v34 = vadd.f32 %v375_v59, %v337_v31  ;;  %v369_v38 = vpop.permute.xlu0 %368  ;;  %v491_v61 = vmul.f32 %v490_v52, %v1474_v32  ;;  %v569_v32 = vrot.slane %v1547_v7, %v568_v63 }
 0x13e   : > { %v290_v45 = vpop.permute.xlu1 %289  ;;  %v378_v58 = vmul.f32 %v374_v19, %v369_v38  ;;  %v494_v59 = vmul.f32 %v490_v52, %v1481_v44  ;;  %v492_v38 = vmul.f32 %v490_v52, %v1468_v26 }
 0x13f   : > { %v299_v48 = vmul.f32 %v295_v43, %v290_v45  ;;  %v416_v50 = vadd.f32 %v412_v33, %v379_v34  ;;  %v339_v36 = vadd.f32 %v335_v17, %v302_v29  ;;  %v413_v43 = vmul.f32 %v411_v40, %v1452_v10 }
 0x140   : > { %v570_v34 = vmul.f32 %v569_v32, %v1490_v53  ;;  %v493_v53 = vmul.f32 %v490_v52, %v1486_v47  ;;  %v572_v47 = vmul.f32 %v569_v32, %v1498_v2 }
 0x141   : > { %v303_v57 = vadd.f32 %v299_v48, %v261_v22  ;;  %v435_v54 = vpop.permute.xlu0 %434  ;;  %v532_v22 = vrot.slane %v1552_v9, %v489_v62 }
 0x142   : > { %v360_v49 = vpop.permute.xlu1 %359  ;;  %v454_v12 = vmul.f32 %v453_v1, %v435_v54 }
 0x143   : > { %v340_v60 = vadd.f32 %v336_v56, %v303_v57  ;;  %v376_v16 = vmul.f32 %v374_v19, %v360_v49  ;;  %v573_v57 = vmul.f32 %v569_v32, %v1503_v6 }
 0x144   : > { %v458_v0 = vadd.f32 %v454_v12, %v416_v50  ;;  %v611_v50 = vrot.slane %v1552_v9, %v568_v63 }
 0x145   : > { %v382_v4 = vadd.f32 %v378_v58, %v340_v60  ;;  %v380_v11 = vadd.f32 %v376_v16, %v338_v51  ;;  %v448_v18 = vpop.permute.xlu0 %447 }
 0x146   : > { %v364_v8 = vpop.permute.xlu1 %363  ;;  %v457_v41 = vmul.f32 %v453_v1, %v448_v18  ;;  %v495_v20 = vadd.f32 %v491_v61, %v458_v0 }
 0x147   : > { %v377_v23 = vmul.f32 %v374_v19, %v364_v8  ;;  %v419_v13 = vadd.f32 %v415_v35, %v382_v4  ;;  %v417_v15 = vadd.f32 %v413_v43, %v380_v11  ;;  %v647_v19 = vsub.s32 6, %v1541_v3 }
 0x148   : > { %v726_v8 = vsub.s32 7, %v1541_v3 }
 0x149   : > { %v381_v10 = vadd.f32 %v377_v23, %v339_v36  ;;  %v461_v30 = vadd.f32 %v457_v41, %v419_v13  ;;  %v514_v24 = vpop.permute.xlu0 %513  ;;  %v648_v58 = vrot.slane %v1547_v7, %v647_v19 }
 0x14a   : > { %v439_v31 = vpop.permute.xlu1 %438  ;;  %v533_v51 = vmul.f32 %v532_v22, %v514_v24 }
 0x14b   : > { %v455_v17 = vmul.f32 %v453_v1, %v439_v31  ;;  %v418_v33 = vadd.f32 %v414_v25, %v381_v10  ;;  %v498_v29 = vadd.f32 %v494_v59, %v461_v30  ;;  %v649_v43 = vmul.f32 %v648_v58, %v1501_v5 }
 0x14c   : > { %v537_v62 = vadd.f32 %v533_v51, %v495_v20  ;;  %v690_v20 = vrot.slane %v1552_v9, %v647_v19  ;;  %v727_v5 = vrot.slane %v1547_v7, %v726_v8  ;;  %v651_v2 = vmul.f32 %v648_v58, %v1514_v21 }
 0x14d   : > { %v459_v45 = vadd.f32 %v455_v17, %v417_v15  ;;  %v527_v48 = vpop.permute.xlu0 %526  ;;  %v650_v15 = vmul.f32 %v648_v58, %v1508_v14  ;;  %v652_v7 = vmul.f32 %v648_v58, %v1518_v27 }
 0x14e   : > { %v443_v28 = vpop.permute.xlu1 %442  ;;  %v536_v40 = vmul.f32 %v532_v22, %v527_v48  ;;  %v574_v44 = vadd.f32 %v570_v34, %v537_v62  ;;  %v728_v3 = vmul.f32 %v727_v5, %v1523_v37  ;;  %v729_v62 = vmul.f32 %v727_v5, %v1525_v39 }
 0x14f   : > { %v456_v36 = vmul.f32 %v453_v1, %v443_v28  ;;  %v496_v56 = vadd.f32 %v492_v38, %v459_v45  ;;  %v571_v1 = vmul.f32 %v569_v32, %v1484_v46  ;;  %v730_v28 = vmul.f32 %v727_v5, %v1527_v42 }
 0x150   : > { %v540_v54 = vadd.f32 %v536_v40, %v498_v29  ;;  %v731_v27 = vmul.f32 %v727_v5, %v1533_v55  ;;  %v1312_v5 = vmov 2  }
 0x151   : > { %v460_v49 = vadd.f32 %v456_v36, %v418_v33  ;;  %v593_v12 = vpop.permute.xlu0 %592 }
 0x152   : > { %v518_v60 = vpop.permute.xlu1 %517  ;;  %v612_v26 = vmul.f32 %v611_v50, %v593_v12  ;;  %v577_v16 = vadd.f32 %v573_v57, %v540_v54 }
 0x153   : > { %v534_v61 = vmul.f32 %v532_v22, %v518_v60  ;;  %v497_v0 = vadd.f32 %v493_v53, %v460_v49 }
 0x154   : > { %v616_v35 = vadd.f32 %v612_v26, %v574_v44  ;;  %v769_v44 = vrot.slane %v1552_v9, %v726_v8 }
 0x155   : > { %v538_v63 = vadd.f32 %v534_v61, %v496_v56 }
 0x156   : > { %v522_v4 = vpop.permute.xlu1 %521  ;;  %v653_v6 = vadd.f32 %v649_v43, %v616_v35 }
 0x157   : > { %v535_v11 = vmul.f32 %v532_v22, %v522_v4  ;;  %v575_v18 = vadd.f32 %v571_v1, %v538_v63 }
 0x159   : > { %v539_v52 = vadd.f32 %v535_v11, %v497_v0 }
 0x15a   : > { %v597_v41 = vpop.permute.xlu1 %596 }
 0x15b   : > { %v613_v23 = vmul.f32 %v611_v50, %v597_v41  ;;  %v576_v13 = vadd.f32 %v572_v47, %v539_v52 }
 0x15d   : > { %v617_v46 = vadd.f32 %v613_v23, %v575_v18  ;;  %v672_v25 = vpop.permute.xlu0 %671 }
 0x15e   : > { %v601_v59 = vpop.permute.xlu1 %600  ;;  %v691_v10 = vmul.f32 %v690_v20, %v672_v25  ;;  %v1315_v25 = vmov 5  }
 0x15f   : > { %v614_v22 = vmul.f32 %v611_v50, %v601_v59  ;;  %v654_v30 = vadd.f32 %v650_v15, %v617_v46  ;;  %v1313_v15 = vmov 3   ;;  %v1314_v46 = vmov 4  }
 0x160   : > { %v695_v24 = vadd.f32 %v691_v10, %v653_v6  ;;  %v1316_v59 = vmov 6   ;;  %v1317_v10 = vmov 7  }
 0x161   : > { %v618_v32 = vadd.f32 %v614_v22, %v576_v13  ;;  %v1311_v13 = vmov 1  }
 0x162   : > { %v606_v31 = vpop.permute.xlu1 %605  ;;  %v732_v51 = vadd.f32 %v728_v3, %v695_v24 }
 0x163   : > { %v615_v17 = vmul.f32 %v611_v50, %v606_v31  ;;  %v655_v33 = vadd.f32 %v651_v2, %v618_v32 }
 0x165   : > { %v619_v29 = vadd.f32 %v615_v17, %v577_v16 }
 0x166   : > { %v676_v14 = vpop.permute.xlu1 %675 }
 0x167   : > { %v692_v34 = vmul.f32 %v690_v20, %v676_v14  ;;  %v656_v19 = vadd.f32 %v652_v7, %v619_v29 }
 0x169   : > { %v696_v38 = vadd.f32 %v692_v34, %v654_v30 }
 0x16a   : > { %v680_v45 = vpop.permute.xlu1 %679 }
 0x16b   : > { %v693_v48 = vmul.f32 %v690_v20, %v680_v45  ;;  %v733_v37 = vadd.f32 %v729_v62, %v696_v38 }
 0x16d   : > { %v697_v21 = vadd.f32 %v693_v48, %v655_v33 }
 0x16e   : > { %v685_v40 = vpop.permute.xlu1 %684 }
 0x16f   : > { %v694_v50 = vmul.f32 %v690_v20, %v685_v40  ;;  %v734_v36 = vadd.f32 %v730_v28, %v697_v21  ;;  %v1238_v28 = vld [vmem:[%s1347_s14 + $0x40] sm:$0xff]  ;;  %v1239_v40 = vld [vmem:[%s1347_s14 + $0x48] sm:$0xff] }
 0x171   : > { %v698_v56 = vadd.f32 %v694_v50, %v656_v19  ;;  %v759_v57 = vpop.permute.xlu0 %758 }
 0x172   : > { %v751_v58 = vpop.permute.xlu1 %750  ;;  %v772_v54 = vmul.f32 %v769_v44, %v759_v57 }
 0x173   : > { %v770_v53 = vmul.f32 %v769_v44, %v751_v58  ;;  %v735_v39 = vadd.f32 %v731_v27, %v698_v56  ;;  %v1241_v56 = vld [vmem:[%s1347_s14 + $0x8] sm:$0xff]  ;;  %v1242_v58 = vld [vmem:[%s1347_s14 + $0x80] sm:$0xff] }
 0x174   : > { %v776_v49 = vadd.f32 %v772_v54, %v734_v36  ;;  %v1240_v36 = vld [vmem:[%s1347_s14] sm:$0xff] }
 0x175   : > { %v774_v12 = vadd.f32 %v770_v53, %v732_v51  ;;  %v1243_v53 = vld [vmem:[%s1347_s14 + $0x88] sm:$0xff] }
 0x176   : > { %v1184_v60 = vmul.f32 -1.442695, %v776_v49  ;;  %v755_v26 = vpop.permute.xlu1 %754 }
 0x177   : > { %v1182_v16 = vmul.f32 -1.442695, %v774_v12  ;;  %v771_v42 = vmul.f32 %v769_v44, %v755_v26  ;;  %v1244_v12 = vld [vmem:[%s1347_s14 + $0x10] sm:$0xff]  ;;  %v1245_v26 = vld [vmem:[%s1347_s14 + $0x18] sm:$0xff] }
 0x178   : > { %1222 = vpow2.f32 %v1184_v60 }
 0x179   : > { %1224 = vpow2.f32 %v1182_v16  ;;  %v775_v61 = vadd.f32 %v771_v42, %v733_v37 }
 0x17a   : > { %v764_v9 = vpop.permute.xlu1 %763 }
 0x17b   : > { %v1183_v0 = vmul.f32 -1.442695, %v775_v61  ;;  %v773_v43 = vmul.f32 %v769_v44, %v764_v9  ;;  %v1246_v9 = vld [vmem:[%s1347_s14 + $0x20] sm:$0xff] }
 0x17d   : > { %1226 = vpow2.f32 %v1183_v0  ;;  %v777_v55 = vadd.f32 %v773_v43, %v735_v39  ;;  %v1247_v43 = vld [vmem:[%s1347_s14 + $0x28] sm:$0xff] }
 0x17f   : > { %v1185_v35 = vmul.f32 -1.442695, %v777_v55 }
 0x181   : > { %1228 = vpow2.f32 %v1185_v35  ;;  %v1248_v35 = vld [vmem:[%s1347_s14 + $0x50] sm:$0xff] }
 0x182   : > { %v1223_v1 = vpop.eup %1222 }
 0x183   : > { %v1225_v63 = vpop.eup %1224  ;;  %v792_v6 = vadd.f32 1.0, %v1223_v1 }
 0x184   : > { %v790_v4 = vadd.f32 1.0, %v1225_v63  ;;  %v1249_v63 = vld [vmem:[%s1347_s14 + $0x58] sm:$0xff] }
 0x186   : > { %1230 = vrcp.f32 %v790_v4 }
 0x187   : > { %v1227_v11 = vpop.eup %1226  ;;  %1232 = vrcp.f32 %v792_v6 }
 0x188   : > { %v791_v18 = vadd.f32 1.0, %v1227_v11 }
 0x18a   : > { %1234 = vrcp.f32 %v791_v18  ;;  %v1250_v18 = vld [vmem:[%s1347_s14 + $0xc0] sm:$0xff] }
 0x18b   : > { %v1229_v8 = vpop.eup %1228 }
 0x18c   : > { %v793_v47 = vadd.f32 1.0, %v1229_v8 }
 0x18e   : > { %1236 = vrcp.f32 %v793_v47  ;;  %v1251_v47 = vld [vmem:[%s1347_s14 + $0xc8] sm:$0xff] }
 0x190   : > { %v1231_v52 = vpop.eup %1230 }
 0x191   : > { %804 = vperm.xlu0 %1206, %v1231_v52   ;;  %v1233_v41 = vpop.eup %1232 }
 0x194   : > { %v1235_v20 = vpop.eup %1234 }
 0x195   : > { %809 = vperm.xlu1 %1207, %v1235_v20   ;;  %814 = vperm.xlu0 %1206, %v1233_v41  }
 0x198   : > { %v1237_v23 = vpop.eup %1236 }
 0x199   : > { %819 = vperm.xlu1 %1207, %v1237_v23   ;;  %1208 = vset.pattern.permute.xlu0 %v1311_v13 }
 0x19a   : > { %831 = vperm.xlu0 %1208, %v1231_v52  }
 0x19d   : > { %1209 = vset.pattern.permute.xlu1 %v1311_v13  ;;  %v1253_v13 = vld [vmem:[%s1347_s14 + $0x78] sm:$0xff] }
 0x19e   : > { %835 = vperm.xlu1 %1209, %v1235_v20   ;;  %843 = vperm.xlu0 %1208, %v1237_v23  }
 0x1a2   : > { %839 = vperm.xlu1 %1209, %v1233_v41   ;;  %1211 = vset.pattern.permute.xlu0 %v1312_v5 }
 0x1a3   : > { %867 = vperm.xlu0 %1211, %v1235_v20  }
 0x1a6   : > { %1210 = vset.pattern.permute.xlu1 %v1312_v5 }
 0x1a7   : > { %863 = vperm.xlu1 %1210, %v1231_v52   ;;  %1212 = vset.pattern.permute.xlu0 %v1313_v15 }
 0x1a8   : > { %895 = vperm.xlu0 %1212, %v1231_v52  }
 0x1ab   : > { %871 = vperm.xlu1 %1210, %v1233_v41  }
 0x1ac   : > { %907 = vperm.xlu0 %1212, %v1237_v23  }
 0x1af   : > { %875 = vperm.xlu1 %1210, %v1237_v23  }
 0x1b0   : > { %1215 = vset.pattern.permute.xlu0 %v1314_v46 }
 0x1b1   : > { %931 = vperm.xlu0 %1215, %v1235_v20  }
 0x1b3   : > { %1213 = vset.pattern.permute.xlu1 %v1313_v15  ;;  %v1254_v15 = vld [vmem:[%s1347_s14 + $0x60] sm:$0xff] }
 0x1b4   : > { %899 = vperm.xlu1 %1213, %v1235_v20  }
 0x1b5   : > { %1216 = vset.pattern.permute.xlu0 %v1315_v25 }
 0x1b6   : > { %959 = vperm.xlu0 %1216, %v1231_v52  }
 0x1b8   : > { %903 = vperm.xlu1 %1213, %v1233_v41  }
 0x1ba   : > { %971 = vperm.xlu0 %1216, %v1237_v23  }
 0x1bc   : > { %1214 = vset.pattern.permute.xlu1 %v1314_v46 }
 0x1bd   : > { %927 = vperm.xlu1 %1214, %v1231_v52  }
 0x1be   : > { %1219 = vset.pattern.permute.xlu0 %v1316_v59 }
 0x1bf   : > { %995 = vperm.xlu0 %1219, %v1235_v20  }
 0x1c1   : > { %935 = vperm.xlu1 %1214, %v1233_v41  }
 0x1c3   : > { %1220 = vset.pattern.permute.xlu0 %v1317_v10 }
 0x1c4   : > { %1023 = vperm.xlu0 %1220, %v1231_v52  }
 0x1c5   : > { %939 = vperm.xlu1 %1214, %v1237_v23  }
 0x1c8   : > { %1035 = vperm.xlu0 %1220, %v1237_v23  }
 0x1c9   : > { %1217 = vset.pattern.permute.xlu1 %v1315_v25  ;;  %v1255_v25 = vld [vmem:[%s1347_s14 + $0x68] sm:$0xff] }
 0x1ca   : > { %963 = vperm.xlu1 %1217, %v1235_v20  }
 0x1ce   : > { %967 = vperm.xlu1 %1217, %v1233_v41  }
 0x1d2   : > { %1218 = vset.pattern.permute.xlu1 %v1316_v59 }
 0x1d3   : > { %991 = vperm.xlu1 %1218, %v1231_v52  }
 0x1d7   : > { %999 = vperm.xlu1 %1218, %v1233_v41  }
 0x1db   : > { %1003 = vperm.xlu1 %1218, %v1237_v23  }
 0x1df   : > { %1221 = vset.pattern.permute.xlu1 %v1317_v10  ;;  %v1256_v10 = vld [vmem:[%s1347_s14 + $0x90] sm:$0xff] }
 0x1e0   : > { %1027 = vperm.xlu1 %1221, %v1235_v20   ;;  %v1252_v20 = vld [vmem:[%s1347_s14 + $0x70] sm:$0xff] }
 0x1e4   : > { %1031 = vperm.xlu1 %1221, %v1233_v41  }
 0x210   : > { %v805_v22 = vpop.permute.xlu0 %804 }
 0x211   : > { %v822_v27 = vmul.f32 %v1240_v36, %v805_v22  ;;  %v823_v57 = vmul.f32 %v1241_v56, %v805_v22 }
 0x214   : > { %v810_v30 = vpop.permute.xlu1 %809  ;;  %v815_v3 = vpop.permute.xlu0 %814 }
 0x215   : > { %v824_v60 = vmul.f32 %v1244_v12, %v810_v30  ;;  %v825_v16 = vmul.f32 %v1245_v26, %v810_v30  ;;  %v826_v0 = vmul.f32 %v1246_v9, %v815_v3  ;;  %v827_v55 = vmul.f32 %v1247_v43, %v815_v3  ;;  %v1257_v30 = vld [vmem:[%s1347_s14 + $0x98] sm:$0xff]  ;;  %v1264_v9 = vld [vmem:[%s1347_s14 + $0xd0] sm:$0xff] }
 0x218   : > { %v1609_v24 = vpop.permute.xlu1 %819 }
 0x219   : > { %v832_v2 = vpop.permute.xlu0 %831 }
 0x21a   : > { %v846_v21 = vmul.f32 %v1238_v28, %v832_v2  ;;  %v847_v44 = vmul.f32 %v1239_v40, %v832_v2  ;;  %v1258_v2 = vld [vmem:[%s1347_s14 + $0x100] sm:$0xff]  ;;  %v1260_v28 = vld [vmem:[%s1347_s14 + $0x30] sm:$0xff]  ;;  %v1261_v40 = vld [vmem:[%s1347_s14 + $0x38] sm:$0xff] }
 0x21c   : > { %v854_v42 = vadd.f32 %v846_v21, %v822_v27  ;;  %v855_v61 = vadd.f32 %v847_v44, %v823_v57  ;;  %v828_v21 = vmul.f32 %v1260_v28, %v1609_v24  ;;  %v1262_v44 = vld [vmem:[%s1347_s14 + $0xb0] sm:$0xff]  ;;  %v1263_v27 = vld [vmem:[%s1347_s14 + $0xb8] sm:$0xff]  ;;  %v1277_v28 = vld [vmem:[%s1347_s14 + $0x1c8] sm:$0xff] }
 0x21d   : > { %v836_v32 = vpop.permute.xlu1 %835  ;;  %v844_v51 = vpop.permute.xlu0 %843 }
 0x21e   : > { %v848_v1 = vmul.f32 %v1248_v35, %v836_v32  ;;  %v849_v4 = vmul.f32 %v1249_v63, %v836_v32  ;;  %v852_v23 = vmul.f32 %v1252_v20, %v844_v51  ;;  %v853_v5 = vmul.f32 %v1253_v13, %v844_v51  ;;  %v1265_v35 = vld [vmem:[%s1347_s14 + $0xd8] sm:$0xff]  ;;  %v1267_v63 = vld [vmem:[%s1347_s14 + $0xa8] sm:$0xff]  ;;  %v1272_v13 = vld [vmem:[%s1347_s14 + $0x130] sm:$0xff] }
 0x21f   : > { %v829_v51 = vmul.f32 %v1261_v40, %v1609_v24 }
 0x220   : > { %v857_v57 = vadd.f32 %v849_v4, %v825_v16 }
 0x221   : > { %v840_v31 = vpop.permute.xlu1 %839  ;;  %v861_v24 = vadd.f32 %v853_v5, %v829_v51  ;;  %v1278_v51 = vld [vmem:[%s1347_s14 + $0x110] sm:$0xff] }
 0x222   : > { %v868_v33 = vpop.permute.xlu0 %867  ;;  %v850_v46 = vmul.f32 %v1254_v15, %v840_v31  ;;  %v851_v59 = vmul.f32 %v1255_v25, %v840_v31 }
 0x223   : > { %v880_v22 = vmul.f32 %v1256_v10, %v868_v33  ;;  %v881_v3 = vmul.f32 %v1257_v30, %v868_v33  ;;  %v856_v33 = vadd.f32 %v848_v1, %v824_v60  ;;  %v1266_v1 = vld [vmem:[%s1347_s14 + $0xa0] sm:$0xff] }
 0x224   : > { %v1669_v12 = vadd.f32 %v851_v59, %v827_v55  ;;  %v1274_v59 = vld [vmem:[%s1347_s14 + $0x180] sm:$0xff] }
 0x225   : > { %v889_v26 = vadd.f32 %v881_v3, %v857_v57 }
 0x226   : > { %v864_v17 = vpop.permute.xlu1 %863 }
 0x227   : > { %v896_v29 = vpop.permute.xlu0 %895  ;;  %v878_v54 = vmul.f32 %v1242_v58, %v864_v17  ;;  %v879_v39 = vmul.f32 %v1243_v53, %v864_v17  ;;  %v1259_v17 = vld [vmem:[%s1347_s14 + $0x108] sm:$0xff]  ;;  %v860_v53 = vadd.f32 %v852_v23, %v828_v21 }
 0x228   : > { %v910_v8 = vmul.f32 %v1250_v18, %v896_v29  ;;  %v911_v52 = vmul.f32 %v1251_v47, %v896_v29  ;;  %v1269_v18 = vld [vmem:[%s1347_s14 + $0x148] sm:$0xff]  ;;  %v1270_v47 = vld [vmem:[%s1347_s14 + $0xf0] sm:$0xff] }
 0x229   : > { %v886_v6 = vadd.f32 %v878_v54, %v854_v42  ;;  %v887_v11 = vadd.f32 %v879_v39, %v855_v61  ;;  %v1667_v39 = vadd.f32 %v850_v46, %v826_v0 }
 0x22a   : > { %v1611_v7 = vpop.permute.xlu1 %871 }
 0x22b   : > { %v1617_v19 = vpop.permute.xlu0 %907  ;;  %v918_v58 = vadd.f32 %v910_v8, %v886_v6  ;;  %v882_v55 = vmul.f32 %v1266_v1, %v1611_v7  ;;  %v883_v4 = vmul.f32 %v1267_v63, %v1611_v7  ;;  %v1268_v6 = vld [vmem:[%s1347_s14 + $0x140] sm:$0xff]  ;;  %v1273_v7 = vld [vmem:[%s1347_s14 + $0x138] sm:$0xff] }
 0x22e   : > { %v1613_v14 = vpop.permute.xlu1 %875 }
 0x22f   : > { %v884_v36 = vmul.f32 %v1262_v44, %v1613_v14  ;;  %v885_v31 = vmul.f32 %v1263_v27, %v1613_v14  ;;  %v888_v14 = vadd.f32 %v880_v22, %v856_v33  ;;  %v1275_v22 = vld [vmem:[%s1347_s14 + $0x188] sm:$0xff] }
 0x230   : > { %v1621_v38 = vpop.permute.xlu0 %931 }
 0x231   : > { %v892_v16 = vadd.f32 %v884_v36, %v860_v53  ;;  %v893_v61 = vadd.f32 %v885_v31, %v861_v24  ;;  %v944_v44 = vmul.f32 %v1278_v51, %v1621_v38  ;;  %v1279_v36 = vld [vmem:[%s1347_s14 + $0x118] sm:$0xff] }
 0x232   : > { %v945_v27 = vmul.f32 %v1279_v36, %v1621_v38  ;;  %v1281_v53 = vld [vmem:[%s1347_s14 + $0x158] sm:$0xff] }
 0x233   : > { %v1615_v34 = vpop.permute.xlu1 %899 }
 0x234   : > { %v912_v43 = vmul.f32 %v1264_v9, %v1615_v34  ;;  %v913_v0 = vmul.f32 %v1265_v35, %v1615_v34  ;;  %v1271_v34 = vld [vmem:[%s1347_s14 + $0xf8] sm:$0xff] }
 0x235   : > { %v1623_v48 = vpop.permute.xlu0 %959  ;;  %v917_v20 = vmul.f32 %v1271_v34, %v1617_v19  ;;  %v1289_v34 = vld [vmem:[%s1347_s14 + $0x1b8] sm:$0xff] }
 0x236   : > { %v975_v8 = vmul.f32 %v1269_v18, %v1623_v48  ;;  %v921_v3 = vadd.f32 %v913_v0, %v889_v26  ;;  %v1282_v26 = vld [vmem:[%s1347_s14 + $0xe0] sm:$0xff]  ;;  %v890_v0 = vadd.f32 %v882_v55, %v1667_v39 }
 0x237   : > { %v1619_v62 = vpop.permute.xlu1 %903 }
 0x238   : > { %v953_v63 = vadd.f32 %v945_v27, %v921_v3  ;;  %v1294_v3 = vld [vmem:[%s1347_s14 + $0x160] sm:$0xff]  ;;  %v1298_v27 = vld [vmem:[%s1347_s14 + $0x1d0] sm:$0xff] }
 0x239   : > { %v1635_v49 = vpop.permute.xlu0 %971 }
 0x23c   : > { %v928_v45 = vpop.permute.xlu1 %927 }
 0x23d   : > { %v942_v32 = vmul.f32 %v1258_v2, %v928_v45  ;;  %v943_v29 = vmul.f32 %v1259_v17, %v928_v45  ;;  %v919_v45 = vadd.f32 %v911_v52, %v887_v11  ;;  %v974_v11 = vmul.f32 %v1268_v6, %v1623_v48  ;;  %v1276_v17 = vld [vmem:[%s1347_s14 + $0x1c0] sm:$0xff] }
 0x23e   : > { %v1663_v56 = vpop.permute.xlu0 %995  ;;  %v916_v52 = vmul.f32 %v1270_v47, %v1617_v19  ;;  %v920_v19 = vadd.f32 %v912_v43, %v888_v14  ;;  %v1285_v43 = vld [vmem:[%s1347_s14 + $0x178] sm:$0xff]  ;;  %v1286_v6 = vld [vmem:[%s1347_s14 + $0x120] sm:$0xff]  ;;  %v1288_v47 = vld [vmem:[%s1347_s14 + $0x1b0] sm:$0xff] }
 0x23f   : > { %v950_v42 = vadd.f32 %v942_v32, %v918_v58  ;;  %v951_v60 = vadd.f32 %v943_v29, %v919_v45  ;;  %v925_v32 = vadd.f32 %v917_v20, %v893_v61  ;;  %v1280_v58 = vld [vmem:[%s1347_s14 + $0x150] sm:$0xff]  ;;  %v981_v35 = vmul.f32 %v1285_v43, %v1635_v49 }
 0x240   : > { %v1625_v37 = vpop.permute.xlu1 %935  ;;  %v924_v2 = vadd.f32 %v916_v52, %v892_v16  ;;  %v1284_v61 = vld [vmem:[%s1347_s14 + $0x170] sm:$0xff]  ;;  %v952_v1 = vadd.f32 %v944_v44, %v920_v19  ;;  %v1297_v44 = vld [vmem:[%s1347_s14 + $0x1a8] sm:$0xff] }
 0x241   : > { %v982_v25 = vadd.f32 %v974_v11, %v950_v42  ;;  %v983_v48 = vadd.f32 %v975_v8, %v951_v60  ;;  %v914_v42 = vmul.f32 %v1282_v26, %v1619_v62  ;;  %v1283_v60 = vld [vmem:[%s1347_s14 + $0xe8] sm:$0xff]  ;;  %v980_v9 = vmul.f32 %v1284_v61, %v1635_v49 }
 0x242   : > { %v915_v16 = vmul.f32 %v1283_v60, %v1619_v62  ;;  %v946_v62 = vmul.f32 %v1286_v6, %v1625_v37  ;;  %v1287_v11 = vld [vmem:[%s1347_s14 + $0x128] sm:$0xff] }
 0x243   : > { %v1024_v23 = vpop.permute.xlu0 %1023  ;;  %v947_v18 = vmul.f32 %v1287_v11, %v1625_v37  ;;  %v1291_v37 = vld [vmem:[%s1347_s14 + $0x198] sm:$0xff]  ;;  %v1301_v60 = vld [vmem:[%s1347_s14 + $0x1e8] sm:$0xff] }
 0x244   : > { %v1629_v50 = vpop.permute.xlu1 %939  ;;  %v1038_v29 = vmul.f32 %v1276_v17, %v1024_v23 }
 0x245   : > { %v948_v5 = vmul.f32 %v1272_v13, %v1629_v50  ;;  %v949_v15 = vmul.f32 %v1273_v7, %v1629_v50  ;;  %v1039_v50 = vmul.f32 %v1277_v28, %v1024_v23  ;;  %v922_v23 = vadd.f32 %v914_v42, %v890_v0 }
 0x247   : > { %v956_v31 = vadd.f32 %v948_v5, %v924_v2  ;;  %v957_v33 = vadd.f32 %v949_v15, %v925_v32  ;;  %v1036_v8 = vpop.permute.xlu0 %1035  ;;  %v1290_v5 = vld [vmem:[%s1347_s14 + $0x190] sm:$0xff]  ;;  %v1009_v15 = vmul.f32 %v1291_v37, %v1663_v56  ;;  %v1295_v32 = vld [vmem:[%s1347_s14 + $0x168] sm:$0xff] }
 0x248   : > { %v1008_v7 = vmul.f32 %v1290_v5, %v1663_v56 }
 0x249   : > { %v1645_v41 = vpop.permute.xlu1 %963  ;;  %v988_v39 = vadd.f32 %v980_v9, %v956_v31  ;;  %v989_v55 = vadd.f32 %v981_v35, %v957_v33  ;;  %v1299_v33 = vld [vmem:[%s1347_s14 + $0x1d8] sm:$0xff] }
 0x24a   : > { %v976_v45 = vmul.f32 %v1280_v58, %v1645_v41  ;;  %v977_v24 = vmul.f32 %v1281_v53, %v1645_v41  ;;  %v891_v41 = vadd.f32 %v883_v4, %v1669_v12 }
 0x24c   : > { %v984_v12 = vadd.f32 %v976_v45, %v952_v1  ;;  %v985_v4 = vadd.f32 %v977_v24, %v953_v63  ;;  %v923_v13 = vadd.f32 %v915_v16, %v891_v41 }
 0x24d   : > { %v1665_v54 = vpop.permute.xlu1 %967 }
 0x24e   : > { %v955_v19 = vadd.f32 %v947_v18, %v923_v13  ;;  %v978_v2 = vmul.f32 %v1294_v3, %v1665_v54  ;;  %v979_v56 = vmul.f32 %v1295_v32, %v1665_v54 }
 0x250   : > { %v987_v45 = vadd.f32 %v979_v56, %v955_v19 }
 0x252   : > { %v992_v46 = vpop.permute.xlu1 %991 }
 0x253   : > { %v1006_v10 = vmul.f32 %v1274_v59, %v992_v46  ;;  %v1007_v30 = vmul.f32 %v1275_v22, %v992_v46  ;;  %v1292_v46 = vld [vmem:[%s1347_s14 + $0x1f0] sm:$0xff] }
 0x255   : > { %v1014_v21 = vadd.f32 %v1006_v10, %v982_v25  ;;  %v1015_v40 = vadd.f32 %v1007_v30, %v983_v48  ;;  %v1044_v25 = vmul.f32 %v1292_v46, %v1036_v8  ;;  %v1293_v48 = vld [vmem:[%s1347_s14 + $0x1f8] sm:$0xff]  ;;  %v954_v30 = vadd.f32 %v946_v62, %v922_v23 }
 0x256   : > { %v1000_v57 = vpop.permute.xlu1 %999  ;;  %v1045_v59 = vmul.f32 %v1293_v48, %v1036_v8 }
 0x257   : > { %v1046_v14 = vadd.f32 %v1038_v29, %v1014_v21  ;;  %v1047_v38 = vadd.f32 %v1039_v50, %v1015_v40  ;;  %v1016_v50 = vadd.f32 %v1008_v7, %v984_v12  ;;  %v1017_v21 = vadd.f32 %v1009_v15, %v985_v4  ;;  %v1296_v40 = vld [vmem:[%s1347_s14 + $0x1a0] sm:$0xff] }
 0x258   : > { %v1010_v51 = vmul.f32 %v1296_v40, %v1000_v57  ;;  %v1011_v36 = vmul.f32 %v1297_v44, %v1000_v57  ;;  %v986_v54 = vadd.f32 %v978_v2, %v954_v30  ;;  %v1300_v57 = vld [vmem:[%s1347_s14 + $0x1e0] sm:$0xff] }
 0x259   : > { %1054 = vst [vmem:[%s1703_s22] sm:$0xff] %v1046_v14  ;;  %1055 = vst [vmem:[%s1703_s22 + $0x8] sm:$0xff] %v1047_v38 }
 0x25a   : > { %v1004_v49 = vpop.permute.xlu1 %1003  ;;  %v1018_v38 = vadd.f32 %v1010_v51, %v986_v54  ;;  %v1019_v26 = vadd.f32 %v1011_v36, %v987_v45 }
 0x25b   : > { %v1012_v52 = vmul.f32 %v1288_v47, %v1004_v49  ;;  %v1013_v20 = vmul.f32 %v1289_v34, %v1004_v49 }
 0x25d   : > { %v1020_v10 = vadd.f32 %v1012_v52, %v988_v39  ;;  %v1021_v22 = vadd.f32 %v1013_v20, %v989_v55 }
 0x25f   : > { %v1052_v17 = vadd.f32 %v1044_v25, %v1020_v10  ;;  %v1053_v29 = vadd.f32 %v1045_v59, %v1021_v22  ;;  %v1028_v28 = vpop.permute.xlu1 %1027 }
 0x260   : > { %v1040_v31 = vmul.f32 %v1298_v27, %v1028_v28  ;;  %v1041_v58 = vmul.f32 %v1299_v33, %v1028_v28 }
 0x261   : > { %1060 = vst [vmem:[%s1703_s22 + $0x30] sm:$0xff] %v1052_v17  ;;  %1061 = vst [vmem:[%s1703_s22 + $0x38] sm:$0xff] %v1053_v29 }
 0x262   : > { %v1048_v53 = vadd.f32 %v1040_v31, %v1016_v50  ;;  %v1049_v24 = vadd.f32 %v1041_v58, %v1017_v21 }
 0x263   : > { %v1032_v14 = vpop.permute.xlu1 %1031 }
 0x264   : > { %1056 = vst [vmem:[%s1703_s22 + $0x10] sm:$0xff] %v1048_v53  ;;  %1057 = vst [vmem:[%s1703_s22 + $0x18] sm:$0xff] %v1049_v24  ;;  %v1042_v42 = vmul.f32 %v1300_v57, %v1032_v14  ;;  %v1043_v16 = vmul.f32 %v1301_v60, %v1032_v14 }
 0x266   : > { %v1050_v61 = vadd.f32 %v1042_v42, %v1018_v38  ;;  %v1051_v9 = vadd.f32 %v1043_v16, %v1019_v26 }
 0x268   : > { %1058 = vst [vmem:[%s1703_s22 + $0x20] sm:$0xff] %v1050_v61  ;;  %1059 = vst [vmem:[%s1703_s22 + $0x28] sm:$0xff] %v1051_v9 }
 0x269 PF: > { %s12_s9 = sadd.s32 1, %s1308_s9  }
 0x26a   : > { %p9_p4 = scmp.ge.s32.totalorder %s12_s9, 4  }
 0x26c   :  { %11 = sbr.rel (!%p9_p4) target bundleno = 1 (0x1), region = 65 }

</bundles_post_ra>
